<compile_context>
chip_gen: v5e
topology: v5e:2x2
jax: 0.10.0
libtpu: 0.0.40
codegen_flags: <defaults>
</compile_context>

<pallas_src>
import functools

import jax
import jax.numpy as jnp
from jax.experimental import pallas as pl
from jax.experimental.pallas import tpu as pltpu


def _cross_modal_attn_kernel(rgb_ref, depth_ref,
                             wq_ref, bq_ref,
                             wkv_ref, bkv_ref,
                             wo_ref, bo_ref,
                             out_ref, ctx_ref,
                             *, batch_block, seq_len, num_heads, head_dim):
    bb, S, H, hd = batch_block, seq_len, num_heads, head_dim
    D = H * hd
    rows = bb * S

    rgb = rgb_ref[...]        # (rows, D) bf16
    depth = depth_ref[...]    # (rows, D) bf16

    # Projections: bf16 MXU inputs, f32 accumulation, f32 bias add.
    # 1/sqrt(head_dim) is already folded into wq_ref / bq_ref on the host.
    q = jnp.dot(rgb, wq_ref[...],
                preferred_element_type=jnp.float32) + bq_ref[...]     # (rows, D)
    kv = jnp.dot(depth, wkv_ref[...],
                 preferred_element_type=jnp.float32) + bkv_ref[...]   # (rows, 2D)

    # Head-friendly 3-D views.  Splitting the row (sublane) dim into (bb, S)
    # is layout-free when S is a multiple of 8 (true for the test shapes).
    q3 = q.reshape(bb, S, D).astype(jnp.bfloat16)
    kv3 = kv.reshape(bb, S, 2 * D).astype(jnp.bfloat16)

    for h in range(H):  # static unroll; each dot is batched over bb
        qh = kv_slice = None  # (readability only)
        qh = q3[:, :, h * hd:(h + 1) * hd]             # (bb, S, hd)
        kh = kv3[:, :, h * hd:(h + 1) * hd]            # (bb, S, hd)
        vh = kv3[:, :, D + h * hd:D + (h + 1) * hd]    # (bb, S, hd)

        s = jnp.einsum("bqd,bkd->bqk", qh, kh,
                       preferred_element_type=jnp.float32)            # (bb,S,S)
        s = s - jnp.max(s, axis=-1, keepdims=True)                    # XLU reduce
        p = jnp.exp(s)                                                # EUP
        l = jnp.sum(p, axis=-1, keepdims=True)                        # (bb,S,1)

        ctx_h = jnp.einsum("bqk,bkd->bqd", p.astype(jnp.bfloat16), vh,
                           preferred_element_type=jnp.float32)        # (bb,S,hd)
        # Deferred normalization on the small (S, hd) context via EUP recip.
        ctx_ref[:, :, h * hd:(h + 1) * hd] = ctx_h * pl.reciprocal(l, approx=True)

    ctx = ctx_ref[...].reshape(rows, D).astype(jnp.bfloat16)
    fused = (jnp.dot(ctx, wo_ref[...], preferred_element_type=jnp.float32)
             + bo_ref[...])
    out_ref[...] = fused.astype(out_ref.dtype)


def _choose_batch_block(B, S, target_rows=512):
    """Largest divisor of B whose block row-count is sublane-aligned (%8==0)
    and <= target_rows; fall back to the whole batch (full-array block is
    always legal w.r.t. the (8,128) constraint)."""
    best = None
    for bb in range(1, B + 1):
        if B % bb:
            continue
        rows = bb * S
        if rows % 8 == 0 and rows <= target_rows:
            best = bb
    return best if best is not None else B


def cross_modal_attention(rgb, depth, params, *, num_heads, batch_block=None):
    """rgb, depth: [B, S, D] float32.  params: dict of (w, b) per linear
    (nn.Linear layout: W is (out, in), b is (out,))."""
    B, S, D = rgb.shape
    head_dim = D // num_heads
    assert head_dim * num_heads == D
    out_dtype = rgb.dtype

    bb = batch_block if batch_block is not None else _choose_batch_block(B, S)
    assert B % bb == 0
    nblk = B // bb
    rows_blk = bb * S

    inv_scale = 1.0 / (head_dim ** 0.5)

    # Pre-transpose weights to (in, out); fuse K|V; fold softmax scale into Q;
    # feed the MXU bf16 (biases stay f32).
    wq = (params["wq"].T * jnp.float32(inv_scale)).astype(jnp.bfloat16)    # (D, D)
    wkv = jnp.concatenate([params["wk"].T, params["wv"].T], axis=1
                          ).astype(jnp.bfloat16)                           # (D, 2D)
    wo = params["wo"].T.astype(jnp.bfloat16)                               # (D, D)
    bq = (params["bq"] * jnp.float32(inv_scale)).reshape(1, D).astype(jnp.float32)
    bkv = jnp.concatenate([params["bk"], params["bv"]]).reshape(1, 2 * D
                          ).astype(jnp.float32)
    bo = params["bo"].reshape(1, D).astype(jnp.float32)

    # Flatten activations to (B*S, D): sublane-dense rows, last dim = full D.
    rgb2d = rgb.reshape(B * S, D).astype(jnp.bfloat16)
    depth2d = depth.reshape(B * S, D).astype(jnp.bfloat16)

    x_spec = pl.BlockSpec((rows_blk, D), lambda i: (i, 0))
    wq_spec = pl.BlockSpec((D, D), lambda i: (0, 0))
    bq_spec = pl.BlockSpec((1, D), lambda i: (0, 0))
    wkv_spec = pl.BlockSpec((D, 2 * D), lambda i: (0, 0))
    bkv_spec = pl.BlockSpec((1, 2 * D), lambda i: (0, 0))

    kernel = functools.partial(
        _cross_modal_attn_kernel,
        batch_block=bb, seq_len=S, num_heads=num_heads, head_dim=head_dim)

    out2d = pl.pallas_call(
        kernel,
        out_shape=jax.ShapeDtypeStruct((B * S, D), out_dtype),
        grid_spec=pltpu.PrefetchScalarGridSpec(
            num_scalar_prefetch=0,
            grid=(nblk,),
            in_specs=[x_spec, x_spec,
                      wq_spec, bq_spec,
                      wkv_spec, bkv_spec,
                      wq_spec, bq_spec],
            out_specs=x_spec,
            scratch_shapes=[pltpu.VMEM((bb, S, D), jnp.float32)],
        ),
        compiler_params=pltpu.CompilerParams(
            dimension_semantics=("parallel",)),
    )(rgb2d, depth2d, wq, bq, wkv, bkv, wo, bo)

    return out2d.reshape(B, S, D)


def _reference(rgb, depth, params, *, num_heads):
    """Pure-JAX f32 reference matching the PyTorch forward exactly."""
    B, S, D = rgb.shape
    hd = D // num_heads
    q = rgb @ params["wq"].T + params["bq"]
    k = depth @ params["wk"].T + params["bk"]
    v = depth @ params["wv"].T + params["bv"]
    q = q.reshape(B, S, num_heads, hd).transpose(0, 2, 1, 3)
    k = k.reshape(B, S, num_heads, hd).transpose(0, 2, 1, 3)
    v = v.reshape(B, S, num_heads, hd).transpose(0, 2, 1, 3)
    scores = jnp.einsum("bhqd,bhkd->bhqk", q, k) / jnp.sqrt(jnp.float32(hd))
    attn = jax.nn.softmax(scores, axis=-1)
    ctx = jnp.einsum("bhqk,bhkd->bhqd", attn, v)
    ctx = ctx.transpose(0, 2, 1, 3).reshape(B, S, D)
    return ctx @ params["wo"].T + params["bo"]


if __name__ == "__main__":
    B, S, D = 2, 8, 32
    num_heads = 8

    key = jax.random.PRNGKey(0)
    keys = jax.random.split(key, 10)

    rgb = jax.random.normal(keys[0], (B, S, D), dtype=jnp.float32)
    depth = jax.random.normal(keys[1], (B, S, D), dtype=jnp.float32)

    # Deterministic nn.Linear-shaped parameters: W is (out, in), b is (out,).
    def init_linear(kw, kb, fan_in, fan_out):
        bound = 1.0 / (fan_in ** 0.5)
        w = jax.random.uniform(kw, (fan_out, fan_in), jnp.float32, -bound, bound)
        b = jax.random.uniform(kb, (fan_out,), jnp.float32, -bound, bound)
        return w, b

    wq, bq = init_linear(keys[2], keys[3], D, D)
    wk, bk = init_linear(keys[4], keys[5], D, D)
    wv, bv = init_linear(keys[6], keys[7], D, D)
    wo, bo = init_linear(keys[8], keys[9], D, D)

    params = dict(wq=wq, bq=bq, wk=wk, bk=bk, wv=wv, bv=bv, wo=wo, bo=bo)

    out = cross_modal_attention(rgb, depth, params, num_heads=num_heads)
    out = jax.block_until_ready(out)

    ref = _reference(rgb, depth, params, num_heads=num_heads)
    assert out.shape == (B, S, D)
    # bf16 MXU inputs + approximate EUP reciprocal => loosened tolerance.
    assert jnp.allclose(out, ref, atol=5e-2, rtol=5e-2), (
        "mismatch vs reference: max abs err = "
        f"{float(jnp.max(jnp.abs(out - ref)))}")

    print("KERNEL_OK")
</pallas_src>

<mosaic_0001>
module attributes {stable_mosaic.version = 11 : i64} {
  func.func @_cross_modal_attn_kernel(%arg0: i32, %arg1: memref<16x32xbf16, #tpu.memory_space<vmem>>, %arg2: memref<16x32xbf16, #tpu.memory_space<vmem>>, %arg3: memref<32x32xbf16, #tpu.memory_space<vmem>>, %arg4: memref<1x32xf32, #tpu.memory_space<vmem>>, %arg5: memref<32x64xbf16, #tpu.memory_space<vmem>>, %arg6: memref<1x64xf32, #tpu.memory_space<vmem>>, %arg7: memref<32x32xbf16, #tpu.memory_space<vmem>>, %arg8: memref<1x32xf32, #tpu.memory_space<vmem>>, %arg9: memref<16x32xf32, #tpu.memory_space<vmem>>, %arg10: memref<2x8x32xf32, #tpu.memory_space<vmem>>) attributes {dimension_semantics = [#tpu.dimension_semantics<parallel>], iteration_bounds = array<i64: 1>, scalar_prefetch = 0 : i64, scratch_operands = 1 : i64, tpu.core_type = #tpu.core_type<tc>, window_params = [{transform_indices = @transform_0, window_bounds = array<i64: 16, 32>}, {transform_indices = @transform_1, window_bounds = array<i64: 16, 32>}, {pipeline_mode = #tpu.pipeline_mode<synchronous>, transform_indices = @transform_2, window_bounds = array<i64: 32, 32>}, {pipeline_mode = #tpu.pipeline_mode<synchronous>, transform_indices = @transform_3, window_bounds = array<i64: 1, 32>}, {pipeline_mode = #tpu.pipeline_mode<synchronous>, transform_indices = @transform_4, window_bounds = array<i64: 32, 64>}, {pipeline_mode = #tpu.pipeline_mode<synchronous>, transform_indices = @transform_5, window_bounds = array<i64: 1, 64>}, {pipeline_mode = #tpu.pipeline_mode<synchronous>, transform_indices = @transform_6, window_bounds = array<i64: 32, 32>}, {pipeline_mode = #tpu.pipeline_mode<synchronous>, transform_indices = @transform_7, window_bounds = array<i64: 1, 32>}, {transform_indices = @transform_8, window_bounds = array<i64: 16, 32>}]} {
    %c0 = arith.constant 0 : index
    %c0_0 = arith.constant 0 : index
    %0 = vector.load %arg1[%c0, %c0_0] : memref<16x32xbf16, #tpu.memory_space<vmem>>, vector<16x32xbf16>
    %c0_1 = arith.constant 0 : index
    %c0_2 = arith.constant 0 : index
    %1 = vector.load %arg2[%c0_1, %c0_2] : memref<16x32xbf16, #tpu.memory_space<vmem>>, vector<16x32xbf16>
    %c0_3 = arith.constant 0 : index
    %c0_4 = arith.constant 0 : index
    %2 = vector.load %arg3[%c0_3, %c0_4] : memref<32x32xbf16, #tpu.memory_space<vmem>>, vector<32x32xbf16>
    %cst = arith.constant dense<0.000000e+00> : vector<16x32xf32>
    %3 = tpu.matmul %0, %2, %cst {dimension_numbers = #tpu.dot_dimension_numbers<[1], [0], [0], [1], [0, 0, 1, 1], [], []>} : vector<16x32xbf16>, vector<32x32xbf16>, vector<16x32xf32> -> vector<16x32xf32>
    %c0_5 = arith.constant 0 : index
    %c0_6 = arith.constant 0 : index
    %4 = vector.load %arg4[%c0_5, %c0_6] : memref<1x32xf32, #tpu.memory_space<vmem>>, vector<1x32xf32>
    %5 = vector.broadcast %4 : vector<1x32xf32> to vector<16x32xf32>
    %6 = arith.addf %3, %5 : vector<16x32xf32>
    %c0_7 = arith.constant 0 : index
    %c0_8 = arith.constant 0 : index
    %7 = vector.load %arg5[%c0_7, %c0_8] : memref<32x64xbf16, #tpu.memory_space<vmem>>, vector<32x64xbf16>
    %cst_9 = arith.constant dense<0.000000e+00> : vector<16x64xf32>
    %8 = tpu.matmul %1, %7, %cst_9 {dimension_numbers = #tpu.dot_dimension_numbers<[1], [0], [0], [1], [0, 0, 1, 1], [], []>} : vector<16x32xbf16>, vector<32x64xbf16>, vector<16x64xf32> -> vector<16x64xf32>
    %c0_10 = arith.constant 0 : index
    %c0_11 = arith.constant 0 : index
    %9 = vector.load %arg6[%c0_10, %c0_11] : memref<1x64xf32, #tpu.memory_space<vmem>>, vector<1x64xf32>
    %10 = vector.broadcast %9 : vector<1x64xf32> to vector<16x64xf32>
    %11 = arith.addf %8, %10 : vector<16x64xf32>
    %12 = vector.shape_cast %6 : vector<16x32xf32> to vector<2x8x32xf32>
    %13 = arith.truncf %12 : vector<2x8x32xf32> to vector<2x8x32xbf16>
    %14 = vector.shape_cast %11 : vector<16x64xf32> to vector<2x8x64xf32>
    %15 = arith.truncf %14 : vector<2x8x64xf32> to vector<2x8x64xbf16>
    %16 = vector.extract_strided_slice %13 {offsets = [0, 0, 0], sizes = [2, 8, 4], strides = [1, 1, 1]} : vector<2x8x32xbf16> to vector<2x8x4xbf16>
    %17 = vector.extract_strided_slice %15 {offsets = [0, 0, 0], sizes = [2, 8, 4], strides = [1, 1, 1]} : vector<2x8x64xbf16> to vector<2x8x4xbf16>
    %18 = vector.extract_strided_slice %15 {offsets = [0, 0, 32], sizes = [2, 8, 4], strides = [1, 1, 1]} : vector<2x8x64xbf16> to vector<2x8x4xbf16>
    "tpu.trace_start"() <{level = 10 : i32, message = "bqd,bkd->bqk"}> : () -> ()
    %cst_12 = arith.constant dense<0.000000e+00> : vector<2x8x8xf32>
    %19 = tpu.matmul %16, %17, %cst_12 {dimension_numbers = #tpu.dot_dimension_numbers<[2], [2], [1], [1], [0, 0, 0, 1, 1, 1], [0], [0]>} : vector<2x8x4xbf16>, vector<2x8x4xbf16>, vector<2x8x8xf32> -> vector<2x8x8xf32>
    "tpu.trace_stop"() : () -> ()
    %cst_13 = arith.constant dense<0xFF800000> : vector<2x8xf32>
    %20 = vector.multi_reduction <maximumf>, %19, %cst_13 [2] : vector<2x8x8xf32> to vector<2x8xf32>
    %21 = vector.shape_cast %20 : vector<2x8xf32> to vector<2x8x1xf32>
    %22 = vector.broadcast %21 : vector<2x8x1xf32> to vector<2x8x8xf32>
    %23 = arith.subf %19, %22 : vector<2x8x8xf32>
    %24 = math.exp %23 : vector<2x8x8xf32>
    %cst_14 = arith.constant dense<0.000000e+00> : vector<2x8xf32>
    %25 = vector.multi_reduction <add>, %24, %cst_14 [2] : vector<2x8x8xf32> to vector<2x8xf32>
    %26 = vector.shape_cast %25 : vector<2x8xf32> to vector<2x8x1xf32>
    %27 = arith.truncf %24 : vector<2x8x8xf32> to vector<2x8x8xbf16>
    "tpu.trace_start"() <{level = 10 : i32, message = "bqk,bkd->bqd"}> : () -> ()
    %cst_15 = arith.constant dense<0.000000e+00> : vector<2x8x4xf32>
    %28 = tpu.matmul %27, %18, %cst_15 {dimension_numbers = #tpu.dot_dimension_numbers<[2], [1], [1], [2], [0, 0, 0, 1, 1, 2], [0], [0]>} : vector<2x8x8xbf16>, vector<2x8x4xbf16>, vector<2x8x4xf32> -> vector<2x8x4xf32>
    "tpu.trace_stop"() : () -> ()
    %29 = tpu.reciprocal %26 {approx = true} : vector<2x8x1xf32> -> vector<2x8x1xf32>
    %30 = vector.broadcast %29 : vector<2x8x1xf32> to vector<2x8x4xf32>
    %31 = arith.mulf %28, %30 : vector<2x8x4xf32>
    %c0_16 = arith.constant 0 : index
    %c0_17 = arith.constant 0 : index
    %c0_18 = arith.constant 0 : index
    %32 = vector.load %arg10[%c0_16, %c0_17, %c0_18] : memref<2x8x32xf32, #tpu.memory_space<vmem>>, vector<2x8x4xf32>
    tpu.vector_store %arg10[%c0_16, %c0_17, %c0_18], %31 {strides = array<i32>} : memref<2x8x32xf32, #tpu.memory_space<vmem>>, vector<2x8x4xf32>,
    %33 = vector.extract_strided_slice %13 {offsets = [0, 0, 4], sizes = [2, 8, 4], strides = [1, 1, 1]} : vector<2x8x32xbf16> to vector<2x8x4xbf16>
    %34 = vector.extract_strided_slice %15 {offsets = [0, 0, 4], sizes = [2, 8, 4], strides = [1, 1, 1]} : vector<2x8x64xbf16> to vector<2x8x4xbf16>
    %35 = vector.extract_strided_slice %15 {offsets = [0, 0, 36], sizes = [2, 8, 4], strides = [1, 1, 1]} : vector<2x8x64xbf16> to vector<2x8x4xbf16>
    "tpu.trace_start"() <{level = 10 : i32, message = "bqd,bkd->bqk"}> : () -> ()
    %cst_19 = arith.constant dense<0.000000e+00> : vector<2x8x8xf32>
    %36 = tpu.matmul %33, %34, %cst_19 {dimension_numbers = #tpu.dot_dimension_numbers<[2], [2], [1], [1], [0, 0, 0, 1, 1, 1], [0], [0]>} : vector<2x8x4xbf16>, vector<2x8x4xbf16>, vector<2x8x8xf32> -> vector<2x8x8xf32>
    "tpu.trace_stop"() : () -> ()
    %cst_20 = arith.constant dense<0xFF800000> : vector<2x8xf32>
    %37 = vector.multi_reduction <maximumf>, %36, %cst_20 [2] : vector<2x8x8xf32> to vector<2x8xf32>
    %38 = vector.shape_cast %37 : vector<2x8xf32> to vector<2x8x1xf32>
    %39 = vector.broadcast %38 : vector<2x8x1xf32> to vector<2x8x8xf32>
    %40 = arith.subf %36, %39 : vector<2x8x8xf32>
    %41 = math.exp %40 : vector<2x8x8xf32>
    %cst_21 = arith.constant dense<0.000000e+00> : vector<2x8xf32>
    %42 = vector.multi_reduction <add>, %41, %cst_21 [2] : vector<2x8x8xf32> to vector<2x8xf32>
    %43 = vector.shape_cast %42 : vector<2x8xf32> to vector<2x8x1xf32>
    %44 = arith.truncf %41 : vector<2x8x8xf32> to vector<2x8x8xbf16>
    "tpu.trace_start"() <{level = 10 : i32, message = "bqk,bkd->bqd"}> : () -> ()
    %cst_22 = arith.constant dense<0.000000e+00> : vector<2x8x4xf32>
    %45 = tpu.matmul %44, %35, %cst_22 {dimension_numbers = #tpu.dot_dimension_numbers<[2], [1], [1], [2], [0, 0, 0, 1, 1, 2], [0], [0]>} : vector<2x8x8xbf16>, vector<2x8x4xbf16>, vector<2x8x4xf32> -> vector<2x8x4xf32>
    "tpu.trace_stop"() : () -> ()
    %46 = tpu.reciprocal %43 {approx = true} : vector<2x8x1xf32> -> vector<2x8x1xf32>
    %47 = vector.broadcast %46 : vector<2x8x1xf32> to vector<2x8x4xf32>
    %48 = arith.mulf %45, %47 : vector<2x8x4xf32>
    %c0_23 = arith.constant 0 : index
    %c0_24 = arith.constant 0 : index
    %c4 = arith.constant 4 : index
    %49 = vector.load %arg10[%c0_23, %c0_24, %c4] : memref<2x8x32xf32, #tpu.memory_space<vmem>>, vector<2x8x4xf32>
    tpu.vector_store %arg10[%c0_23, %c0_24, %c4], %48 {strides = array<i32>} : memref<2x8x32xf32, #tpu.memory_space<vmem>>, vector<2x8x4xf32>,
    %50 = vector.extract_strided_slice %13 {offsets = [0, 0, 8], sizes = [2, 8, 4], strides = [1, 1, 1]} : vector<2x8x32xbf16> to vector<2x8x4xbf16>
    %51 = vector.extract_strided_slice %15 {offsets = [0, 0, 8], sizes = [2, 8, 4], strides = [1, 1, 1]} : vector<2x8x64xbf16> to vector<2x8x4xbf16>
    %52 = vector.extract_strided_slice %15 {offsets = [0, 0, 40], sizes = [2, 8, 4], strides = [1, 1, 1]} : vector<2x8x64xbf16> to vector<2x8x4xbf16>
    "tpu.trace_start"() <{level = 10 : i32, message = "bqd,bkd->bqk"}> : () -> ()
    %cst_25 = arith.constant dense<0.000000e+00> : vector<2x8x8xf32>
    %53 = tpu.matmul %50, %51, %cst_25 {dimension_numbers = #tpu.dot_dimension_numbers<[2], [2], [1], [1], [0, 0, 0, 1, 1, 1], [0], [0]>} : vector<2x8x4xbf16>, vector<2x8x4xbf16>, vector<2x8x8xf32> -> vector<2x8x8xf32>
    "tpu.trace_stop"() : () -> ()
    %cst_26 = arith.constant dense<0xFF800000> : vector<2x8xf32>
    %54 = vector.multi_reduction <maximumf>, %53, %cst_26 [2] : vector<2x8x8xf32> to vector<2x8xf32>
    %55 = vector.shape_cast %54 : vector<2x8xf32> to vector<2x8x1xf32>
    %56 = vector.broadcast %55 : vector<2x8x1xf32> to vector<2x8x8xf32>
    %57 = arith.subf %53, %56 : vector<2x8x8xf32>
    %58 = math.exp %57 : vector<2x8x8xf32>
    %cst_27 = arith.constant dense<0.000000e+00> : vector<2x8xf32>
    %59 = vector.multi_reduction <add>, %58, %cst_27 [2] : vector<2x8x8xf32> to vector<2x8xf32>
    %60 = vector.shape_cast %59 : vector<2x8xf32> to vector<2x8x1xf32>
    %61 = arith.truncf %58 : vector<2x8x8xf32> to vector<2x8x8xbf16>
    "tpu.trace_start"() <{level = 10 : i32, message = "bqk,bkd->bqd"}> : () -> ()
    %cst_28 = arith.constant dense<0.000000e+00> : vector<2x8x4xf32>
    %62 = tpu.matmul %61, %52, %cst_28 {dimension_numbers = #tpu.dot_dimension_numbers<[2], [1], [1], [2], [0, 0, 0, 1, 1, 2], [0], [0]>} : vector<2x8x8xbf16>, vector<2x8x4xbf16>, vector<2x8x4xf32> -> vector<2x8x4xf32>
    "tpu.trace_stop"() : () -> ()
    %63 = tpu.reciprocal %60 {approx = true} : vector<2x8x1xf32> -> vector<2x8x1xf32>
    %64 = vector.broadcast %63 : vector<2x8x1xf32> to vector<2x8x4xf32>
    %65 = arith.mulf %62, %64 : vector<2x8x4xf32>
    %c0_29 = arith.constant 0 : index
    %c0_30 = arith.constant 0 : index
    %c8 = arith.constant 8 : index
    %66 = vector.load %arg10[%c0_29, %c0_30, %c8] : memref<2x8x32xf32, #tpu.memory_space<vmem>>, vector<2x8x4xf32>
    tpu.vector_store %arg10[%c0_29, %c0_30, %c8], %65 {strides = array<i32>} : memref<2x8x32xf32, #tpu.memory_space<vmem>>, vector<2x8x4xf32>,
    %67 = vector.extract_strided_slice %13 {offsets = [0, 0, 12], sizes = [2, 8, 4], strides = [1, 1, 1]} : vector<2x8x32xbf16> to vector<2x8x4xbf16>
    %68 = vector.extract_strided_slice %15 {offsets = [0, 0, 12], sizes = [2, 8, 4], strides = [1, 1, 1]} : vector<2x8x64xbf16> to vector<2x8x4xbf16>
    %69 = vector.extract_strided_slice %15 {offsets = [0, 0, 44], sizes = [2, 8, 4], strides = [1, 1, 1]} : vector<2x8x64xbf16> to vector<2x8x4xbf16>
    "tpu.trace_start"() <{level = 10 : i32, message = "bqd,bkd->bqk"}> : () -> ()
    %cst_31 = arith.constant dense<0.000000e+00> : vector<2x8x8xf32>
    %70 = tpu.matmul %67, %68, %cst_31 {dimension_numbers = #tpu.dot_dimension_numbers<[2], [2], [1], [1], [0, 0, 0, 1, 1, 1], [0], [0]>} : vector<2x8x4xbf16>, vector<2x8x4xbf16>, vector<2x8x8xf32> -> vector<2x8x8xf32>
    "tpu.trace_stop"() : () -> ()
    %cst_32 = arith.constant dense<0xFF800000> : vector<2x8xf32>
    %71 = vector.multi_reduction <maximumf>, %70, %cst_32 [2] : vector<2x8x8xf32> to vector<2x8xf32>
    %72 = vector.shape_cast %71 : vector<2x8xf32> to vector<2x8x1xf32>
    %73 = vector.broadcast %72 : vector<2x8x1xf32> to vector<2x8x8xf32>
    %74 = arith.subf %70, %73 : vector<2x8x8xf32>
    %75 = math.exp %74 : vector<2x8x8xf32>
    %cst_33 = arith.constant dense<0.000000e+00> : vector<2x8xf32>
    %76 = vector.multi_reduction <add>, %75, %cst_33 [2] : vector<2x8x8xf32> to vector<2x8xf32>
    %77 = vector.shape_cast %76 : vector<2x8xf32> to vector<2x8x1xf32>
    %78 = arith.truncf %75 : vector<2x8x8xf32> to vector<2x8x8xbf16>
    "tpu.trace_start"() <{level = 10 : i32, message = "bqk,bkd->bqd"}> : () -> ()
    %cst_34 = arith.constant dense<0.000000e+00> : vector<2x8x4xf32>
    %79 = tpu.matmul %78, %69, %cst_34 {dimension_numbers = #tpu.dot_dimension_numbers<[2], [1], [1], [2], [0, 0, 0, 1, 1, 2], [0], [0]>} : vector<2x8x8xbf16>, vector<2x8x4xbf16>, vector<2x8x4xf32> -> vector<2x8x4xf32>
    "tpu.trace_stop"() : () -> ()
    %80 = tpu.reciprocal %77 {approx = true} : vector<2x8x1xf32> -> vector<2x8x1xf32>
    %81 = vector.broadcast %80 : vector<2x8x1xf32> to vector<2x8x4xf32>
    %82 = arith.mulf %79, %81 : vector<2x8x4xf32>
    %c0_35 = arith.constant 0 : index
    %c0_36 = arith.constant 0 : index
    %c12 = arith.constant 12 : index
    %83 = vector.load %arg10[%c0_35, %c0_36, %c12] : memref<2x8x32xf32, #tpu.memory_space<vmem>>, vector<2x8x4xf32>
    tpu.vector_store %arg10[%c0_35, %c0_36, %c12], %82 {strides = array<i32>} : memref<2x8x32xf32, #tpu.memory_space<vmem>>, vector<2x8x4xf32>,
    %84 = vector.extract_strided_slice %13 {offsets = [0, 0, 16], sizes = [2, 8, 4], strides = [1, 1, 1]} : vector<2x8x32xbf16> to vector<2x8x4xbf16>
    %85 = vector.extract_strided_slice %15 {offsets = [0, 0, 16], sizes = [2, 8, 4], strides = [1, 1, 1]} : vector<2x8x64xbf16> to vector<2x8x4xbf16>
    %86 = vector.extract_strided_slice %15 {offsets = [0, 0, 48], sizes = [2, 8, 4], strides = [1, 1, 1]} : vector<2x8x64xbf16> to vector<2x8x4xbf16>
    "tpu.trace_start"() <{level = 10 : i32, message = "bqd,bkd->bqk"}> : () -> ()
    %cst_37 = arith.constant dense<0.000000e+00> : vector<2x8x8xf32>
    %87 = tpu.matmul %84, %85, %cst_37 {dimension_numbers = #tpu.dot_dimension_numbers<[2], [2], [1], [1], [0, 0, 0, 1, 1, 1], [0], [0]>} : vector<2x8x4xbf16>, vector<2x8x4xbf16>, vector<2x8x8xf32> -> vector<2x8x8xf32>
    "tpu.trace_stop"() : () -> ()
    %cst_38 = arith.constant dense<0xFF800000> : vector<2x8xf32>
    %88 = vector.multi_reduction <maximumf>, %87, %cst_38 [2] : vector<2x8x8xf32> to vector<2x8xf32>
    %89 = vector.shape_cast %88 : vector<2x8xf32> to vector<2x8x1xf32>
    %90 = vector.broadcast %89 : vector<2x8x1xf32> to vector<2x8x8xf32>
    %91 = arith.subf %87, %90 : vector<2x8x8xf32>
    %92 = math.exp %91 : vector<2x8x8xf32>
    %cst_39 = arith.constant dense<0.000000e+00> : vector<2x8xf32>
    %93 = vector.multi_reduction <add>, %92, %cst_39 [2] : vector<2x8x8xf32> to vector<2x8xf32>
    %94 = vector.shape_cast %93 : vector<2x8xf32> to vector<2x8x1xf32>
    %95 = arith.truncf %92 : vector<2x8x8xf32> to vector<2x8x8xbf16>
    "tpu.trace_start"() <{level = 10 : i32, message = "bqk,bkd->bqd"}> : () -> ()
    %cst_40 = arith.constant dense<0.000000e+00> : vector<2x8x4xf32>
    %96 = tpu.matmul %95, %86, %cst_40 {dimension_numbers = #tpu.dot_dimension_numbers<[2], [1], [1], [2], [0, 0, 0, 1, 1, 2], [0], [0]>} : vector<2x8x8xbf16>, vector<2x8x4xbf16>, vector<2x8x4xf32> -> vector<2x8x4xf32>
    "tpu.trace_stop"() : () -> ()
    %97 = tpu.reciprocal %94 {approx = true} : vector<2x8x1xf32> -> vector<2x8x1xf32>
    %98 = vector.broadcast %97 : vector<2x8x1xf32> to vector<2x8x4xf32>
    %99 = arith.mulf %96, %98 : vector<2x8x4xf32>
    %c0_41 = arith.constant 0 : index
    %c0_42 = arith.constant 0 : index
    %c16 = arith.constant 16 : index
    %100 = vector.load %arg10[%c0_41, %c0_42, %c16] : memref<2x8x32xf32, #tpu.memory_space<vmem>>, vector<2x8x4xf32>
    tpu.vector_store %arg10[%c0_41, %c0_42, %c16], %99 {strides = array<i32>} : memref<2x8x32xf32, #tpu.memory_space<vmem>>, vector<2x8x4xf32>,
    %101 = vector.extract_strided_slice %13 {offsets = [0, 0, 20], sizes = [2, 8, 4], strides = [1, 1, 1]} : vector<2x8x32xbf16> to vector<2x8x4xbf16>
    %102 = vector.extract_strided_slice %15 {offsets = [0, 0, 20], sizes = [2, 8, 4], strides = [1, 1, 1]} : vector<2x8x64xbf16> to vector<2x8x4xbf16>
    %103 = vector.extract_strided_slice %15 {offsets = [0, 0, 52], sizes = [2, 8, 4], strides = [1, 1, 1]} : vector<2x8x64xbf16> to vector<2x8x4xbf16>
    "tpu.trace_start"() <{level = 10 : i32, message = "bqd,bkd->bqk"}> : () -> ()
    %cst_43 = arith.constant dense<0.000000e+00> : vector<2x8x8xf32>
    %104 = tpu.matmul %101, %102, %cst_43 {dimension_numbers = #tpu.dot_dimension_numbers<[2], [2], [1], [1], [0, 0, 0, 1, 1, 1], [0], [0]>} : vector<2x8x4xbf16>, vector<2x8x4xbf16>, vector<2x8x8xf32> -> vector<2x8x8xf32>
    "tpu.trace_stop"() : () -> ()
    %cst_44 = arith.constant dense<0xFF800000> : vector<2x8xf32>
    %105 = vector.multi_reduction <maximumf>, %104, %cst_44 [2] : vector<2x8x8xf32> to vector<2x8xf32>
    %106 = vector.shape_cast %105 : vector<2x8xf32> to vector<2x8x1xf32>
    %107 = vector.broadcast %106 : vector<2x8x1xf32> to vector<2x8x8xf32>
    %108 = arith.subf %104, %107 : vector<2x8x8xf32>
    %109 = math.exp %108 : vector<2x8x8xf32>
    %cst_45 = arith.constant dense<0.000000e+00> : vector<2x8xf32>
    %110 = vector.multi_reduction <add>, %109, %cst_45 [2] : vector<2x8x8xf32> to vector<2x8xf32>
    %111 = vector.shape_cast %110 : vector<2x8xf32> to vector<2x8x1xf32>
    %112 = arith.truncf %109 : vector<2x8x8xf32> to vector<2x8x8xbf16>
    "tpu.trace_start"() <{level = 10 : i32, message = "bqk,bkd->bqd"}> : () -> ()
    %cst_46 = arith.constant dense<0.000000e+00> : vector<2x8x4xf32>
    %113 = tpu.matmul %112, %103, %cst_46 {dimension_numbers = #tpu.dot_dimension_numbers<[2], [1], [1], [2], [0, 0, 0, 1, 1, 2], [0], [0]>} : vector<2x8x8xbf16>, vector<2x8x4xbf16>, vector<2x8x4xf32> -> vector<2x8x4xf32>
    "tpu.trace_stop"() : () -> ()
    %114 = tpu.reciprocal %111 {approx = true} : vector<2x8x1xf32> -> vector<2x8x1xf32>
    %115 = vector.broadcast %114 : vector<2x8x1xf32> to vector<2x8x4xf32>
    %116 = arith.mulf %113, %115 : vector<2x8x4xf32>
    %c0_47 = arith.constant 0 : index
    %c0_48 = arith.constant 0 : index
    %c20 = arith.constant 20 : index
    %117 = vector.load %arg10[%c0_47, %c0_48, %c20] : memref<2x8x32xf32, #tpu.memory_space<vmem>>, vector<2x8x4xf32>
    tpu.vector_store %arg10[%c0_47, %c0_48, %c20], %116 {strides = array<i32>} : memref<2x8x32xf32, #tpu.memory_space<vmem>>, vector<2x8x4xf32>,
    %118 = vector.extract_strided_slice %13 {offsets = [0, 0, 24], sizes = [2, 8, 4], strides = [1, 1, 1]} : vector<2x8x32xbf16> to vector<2x8x4xbf16>
    %119 = vector.extract_strided_slice %15 {offsets = [0, 0, 24], sizes = [2, 8, 4], strides = [1, 1, 1]} : vector<2x8x64xbf16> to vector<2x8x4xbf16>
    %120 = vector.extract_strided_slice %15 {offsets = [0, 0, 56], sizes = [2, 8, 4], strides = [1, 1, 1]} : vector<2x8x64xbf16> to vector<2x8x4xbf16>
    "tpu.trace_start"() <{level = 10 : i32, message = "bqd,bkd->bqk"}> : () -> ()
    %cst_49 = arith.constant dense<0.000000e+00> : vector<2x8x8xf32>
    %121 = tpu.matmul %118, %119, %cst_49 {dimension_numbers = #tpu.dot_dimension_numbers<[2], [2], [1], [1], [0, 0, 0, 1, 1, 1], [0], [0]>} : vector<2x8x4xbf16>, vector<2x8x4xbf16>, vector<2x8x8xf32> -> vector<2x8x8xf32>
    "tpu.trace_stop"() : () -> ()
    %cst_50 = arith.constant dense<0xFF800000> : vector<2x8xf32>
    %122 = vector.multi_reduction <maximumf>, %121, %cst_50 [2] : vector<2x8x8xf32> to vector<2x8xf32>
    %123 = vector.shape_cast %122 : vector<2x8xf32> to vector<2x8x1xf32>
    %124 = vector.broadcast %123 : vector<2x8x1xf32> to vector<2x8x8xf32>
    %125 = arith.subf %121, %124 : vector<2x8x8xf32>
    %126 = math.exp %125 : vector<2x8x8xf32>
    %cst_51 = arith.constant dense<0.000000e+00> : vector<2x8xf32>
    %127 = vector.multi_reduction <add>, %126, %cst_51 [2] : vector<2x8x8xf32> to vector<2x8xf32>
    %128 = vector.shape_cast %127 : vector<2x8xf32> to vector<2x8x1xf32>
    %129 = arith.truncf %126 : vector<2x8x8xf32> to vector<2x8x8xbf16>
    "tpu.trace_start"() <{level = 10 : i32, message = "bqk,bkd->bqd"}> : () -> ()
    %cst_52 = arith.constant dense<0.000000e+00> : vector<2x8x4xf32>
    %130 = tpu.matmul %129, %120, %cst_52 {dimension_numbers = #tpu.dot_dimension_numbers<[2], [1], [1], [2], [0, 0, 0, 1, 1, 2], [0], [0]>} : vector<2x8x8xbf16>, vector<2x8x4xbf16>, vector<2x8x4xf32> -> vector<2x8x4xf32>
    "tpu.trace_stop"() : () -> ()
    %131 = tpu.reciprocal %128 {approx = true} : vector<2x8x1xf32> -> vector<2x8x1xf32>
    %132 = vector.broadcast %131 : vector<2x8x1xf32> to vector<2x8x4xf32>
    %133 = arith.mulf %130, %132 : vector<2x8x4xf32>
    %c0_53 = arith.constant 0 : index
    %c0_54 = arith.constant 0 : index
    %c24 = arith.constant 24 : index
    %134 = vector.load %arg10[%c0_53, %c0_54, %c24] : memref<2x8x32xf32, #tpu.memory_space<vmem>>, vector<2x8x4xf32>
    tpu.vector_store %arg10[%c0_53, %c0_54, %c24], %133 {strides = array<i32>} : memref<2x8x32xf32, #tpu.memory_space<vmem>>, vector<2x8x4xf32>,
    %135 = vector.extract_strided_slice %13 {offsets = [0, 0, 28], sizes = [2, 8, 4], strides = [1, 1, 1]} : vector<2x8x32xbf16> to vector<2x8x4xbf16>
    %136 = vector.extract_strided_slice %15 {offsets = [0, 0, 28], sizes = [2, 8, 4], strides = [1, 1, 1]} : vector<2x8x64xbf16> to vector<2x8x4xbf16>
    %137 = vector.extract_strided_slice %15 {offsets = [0, 0, 60], sizes = [2, 8, 4], strides = [1, 1, 1]} : vector<2x8x64xbf16> to vector<2x8x4xbf16>
    "tpu.trace_start"() <{level = 10 : i32, message = "bqd,bkd->bqk"}> : () -> ()
    %cst_55 = arith.constant dense<0.000000e+00> : vector<2x8x8xf32>
    %138 = tpu.matmul %135, %136, %cst_55 {dimension_numbers = #tpu.dot_dimension_numbers<[2], [2], [1], [1], [0, 0, 0, 1, 1, 1], [0], [0]>} : vector<2x8x4xbf16>, vector<2x8x4xbf16>, vector<2x8x8xf32> -> vector<2x8x8xf32>
    "tpu.trace_stop"() : () -> ()
    %cst_56 = arith.constant dense<0xFF800000> : vector<2x8xf32>
    %139 = vector.multi_reduction <maximumf>, %138, %cst_56 [2] : vector<2x8x8xf32> to vector<2x8xf32>
    %140 = vector.shape_cast %139 : vector<2x8xf32> to vector<2x8x1xf32>
    %141 = vector.broadcast %140 : vector<2x8x1xf32> to vector<2x8x8xf32>
    %142 = arith.subf %138, %141 : vector<2x8x8xf32>
    %143 = math.exp %142 : vector<2x8x8xf32>
    %cst_57 = arith.constant dense<0.000000e+00> : vector<2x8xf32>
    %144 = vector.multi_reduction <add>, %143, %cst_57 [2] : vector<2x8x8xf32> to vector<2x8xf32>
    %145 = vector.shape_cast %144 : vector<2x8xf32> to vector<2x8x1xf32>
    %146 = arith.truncf %143 : vector<2x8x8xf32> to vector<2x8x8xbf16>
    "tpu.trace_start"() <{level = 10 : i32, message = "bqk,bkd->bqd"}> : () -> ()
    %cst_58 = arith.constant dense<0.000000e+00> : vector<2x8x4xf32>
    %147 = tpu.matmul %146, %137, %cst_58 {dimension_numbers = #tpu.dot_dimension_numbers<[2], [1], [1], [2], [0, 0, 0, 1, 1, 2], [0], [0]>} : vector<2x8x8xbf16>, vector<2x8x4xbf16>, vector<2x8x4xf32> -> vector<2x8x4xf32>
    "tpu.trace_stop"() : () -> ()
    %148 = tpu.reciprocal %145 {approx = true} : vector<2x8x1xf32> -> vector<2x8x1xf32>
    %149 = vector.broadcast %148 : vector<2x8x1xf32> to vector<2x8x4xf32>
    %150 = arith.mulf %147, %149 : vector<2x8x4xf32>
    %c0_59 = arith.constant 0 : index
    %c0_60 = arith.constant 0 : index
    %c28 = arith.constant 28 : index
    %151 = vector.load %arg10[%c0_59, %c0_60, %c28] : memref<2x8x32xf32, #tpu.memory_space<vmem>>, vector<2x8x4xf32>
    tpu.vector_store %arg10[%c0_59, %c0_60, %c28], %150 {strides = array<i32>} : memref<2x8x32xf32, #tpu.memory_space<vmem>>, vector<2x8x4xf32>,
    %c0_61 = arith.constant 0 : index
    %c0_62 = arith.constant 0 : index
    %c0_63 = arith.constant 0 : index
    %152 = vector.load %arg10[%c0_61, %c0_62, %c0_63] : memref<2x8x32xf32, #tpu.memory_space<vmem>>, vector<2x8x32xf32>
    %153 = vector.shape_cast %152 : vector<2x8x32xf32> to vector<16x32xf32>
    %154 = arith.truncf %153 : vector<16x32xf32> to vector<16x32xbf16>
    %c0_64 = arith.constant 0 : index
    %c0_65 = arith.constant 0 : index
    %155 = vector.load %arg7[%c0_64, %c0_65] : memref<32x32xbf16, #tpu.memory_space<vmem>>, vector<32x32xbf16>
    %cst_66 = arith.constant dense<0.000000e+00> : vector<16x32xf32>
    %156 = tpu.matmul %154, %155, %cst_66 {dimension_numbers = #tpu.dot_dimension_numbers<[1], [0], [0], [1], [0, 0, 1, 1], [], []>} : vector<16x32xbf16>, vector<32x32xbf16>, vector<16x32xf32> -> vector<16x32xf32>
    %c0_67 = arith.constant 0 : index
    %c0_68 = arith.constant 0 : index
    %157 = vector.load %arg8[%c0_67, %c0_68] : memref<1x32xf32, #tpu.memory_space<vmem>>, vector<1x32xf32>
    %158 = vector.broadcast %157 : vector<1x32xf32> to vector<16x32xf32>
    %159 = arith.addf %156, %158 : vector<16x32xf32>
    %c0_69 = arith.constant 0 : index
    %c0_70 = arith.constant 0 : index
    %160 = vector.load %arg9[%c0_69, %c0_70] : memref<16x32xf32, #tpu.memory_space<vmem>>, vector<16x32xf32>
    tpu.vector_store %arg9[%c0_69, %c0_70], %159 {strides = array<i32>} : memref<16x32xf32, #tpu.memory_space<vmem>>, vector<16x32xf32>,
    return
  }
  func.func @transform_0(%arg0: i32) -> (i32, i32) {
    %c0_i32 = arith.constant 0 : i32
    %c0_i32_0 = arith.constant 0 : i32
    return %arg0, %c0_i32 : i32, i32
  }
  func.func @transform_1(%arg0: i32) -> (i32, i32) {
    %c0_i32 = arith.constant 0 : i32
    %c0_i32_0 = arith.constant 0 : i32
    return %arg0, %c0_i32 : i32, i32
  }
  func.func @transform_2(%arg0: i32) -> (i32, i32) {
    %c0_i32 = arith.constant 0 : i32
    %c0_i32_0 = arith.constant 0 : i32
    %c0_i32_1 = arith.constant 0 : i32
    return %c0_i32, %c0_i32_0 : i32, i32
  }
  func.func @transform_3(%arg0: i32) -> (i32, i32) {
    %c0_i32 = arith.constant 0 : i32
    %c0_i32_0 = arith.constant 0 : i32
    %c0_i32_1 = arith.constant 0 : i32
    return %c0_i32, %c0_i32_0 : i32, i32
  }
  func.func @transform_4(%arg0: i32) -> (i32, i32) {
    %c0_i32 = arith.constant 0 : i32
    %c0_i32_0 = arith.constant 0 : i32
    %c0_i32_1 = arith.constant 0 : i32
    return %c0_i32, %c0_i32_0 : i32, i32
  }
  func.func @transform_5(%arg0: i32) -> (i32, i32) {
    %c0_i32 = arith.constant 0 : i32
    %c0_i32_0 = arith.constant 0 : i32
    %c0_i32_1 = arith.constant 0 : i32
    return %c0_i32, %c0_i32_0 : i32, i32
  }
  func.func @transform_6(%arg0: i32) -> (i32, i32) {
    %c0_i32 = arith.constant 0 : i32
    %c0_i32_0 = arith.constant 0 : i32
    %c0_i32_1 = arith.constant 0 : i32
    return %c0_i32, %c0_i32_0 : i32, i32
  }
  func.func @transform_7(%arg0: i32) -> (i32, i32) {
    %c0_i32 = arith.constant 0 : i32
    %c0_i32_0 = arith.constant 0 : i32
    %c0_i32_1 = arith.constant 0 : i32
    return %c0_i32, %c0_i32_0 : i32, i32
  }
  func.func @transform_8(%arg0: i32) -> (i32, i32) {
    %c0_i32 = arith.constant 0 : i32
    %c0_i32_0 = arith.constant 0 : i32
    return %arg0, %c0_i32 : i32, i32
  }
}

</mosaic_0001>

<bundles_post_ra>
// kernel: tpu_custom_call.1
= control target key start
LH: loop header
LB: loop body
LE: loop exit
PB: predicated region body
PF: predicated region fallthrough
CT: control target
= control target key end

     0   :  { %13 = vsyncpa [#allocation4], 0  ;;  %s1912_s0 = inlined_call_operand.hbm [shape: bf16[16,32], index: 0, kind: input, shape index: {}]   ;;  %s1913_s1 = inlined_call_operand.hbm [shape: bf16[16,32], index: 1, kind: input, shape index: {}]   ;;  %s1914_s2 = inlined_call_operand.hbm [shape: bf16[32,32], index: 2, kind: input, shape index: {}]   ;;  %s1915_s3 = inlined_call_operand.vmem [shape: f32[1,32], index: 3, kind: input, shape index: {}]   ;;  %s1916_s4 = inlined_call_operand.hbm [shape: bf16[32,64], index: 4, kind: input, shape index: {}]   ;;  %s1917_s5 = inlined_call_operand.vmem [shape: f32[1,64], index: 5, kind: input, shape index: {}]   ;;  %s1918_s6 = inlined_call_operand.hbm [shape: bf16[32,32], index: 6, kind: input, shape index: {}]   ;;  %s1919_s7 = inlined_call_operand.vmem [shape: f32[1,32], index: 7, kind: input, shape index: {}]   ;;  %s1920_s8 = inlined_call_operand.hbm [shape: f32[16,32], index: 8, kind: output, shape index: {}]  }
   0x1   :  { %14 = vsyncpa [#allocation7], 0 }
   0x2   :  { %15 = vsyncpa [#allocation10], 0 }
   0x3   :  { %16 = vsyncpa [#allocation5], 0  ;;  %s34_s29 = sshll.u32 %s1913_s1, 4  ;;  %s1571_s30 = smov [#allocation6]   ;;  %s35_s29 = int_to_ptr.hbm [resolvable:$true] %s34_s29 }
   0x4   :  { %s36_s9 = sshll.u32 %s1571_s30, 4  ;;  %s62_s12 = sshll.u32 %s1916_s4, 4  ;;  %s37_s9 = int_to_ptr.vmem [resolvable:$true] %s36_s9  ;;  %s63_s12 = int_to_ptr.hbm [resolvable:$true] %s62_s12 }
   0x5   :  { %s1572_s13 = smov 64   ;;  %s1573_s14 = smov 4  }
   0x6   :  { %42 = dma.hbm_to_vmem [thread:$0]  %s35_s29, 128, %s37_s9, [#allocation7], %s1572_s13, %s1572_s13, %s1573_s14  }
   0x7   :  { %s1574_s15 = smov [#allocation9]   ;;  %s21_s19 = sshll.u32 %s1912_s0, 4  ;;  %s22_s19 = int_to_ptr.hbm [resolvable:$true] %s21_s19 }
   0x8   :  { %s64_s16 = sshll.u32 %s1574_s15, 4  ;;  %s47_s21 = sshll.u32 %s1914_s2, 4  ;;  %s65_s16 = int_to_ptr.vmem [resolvable:$true] %s64_s16  ;;  %s48_s21 = int_to_ptr.hbm [resolvable:$true] %s47_s21 }
   0x9   :  { %70 = dma.hbm_to_vmem [thread:$0]  %s63_s12, 256, %s65_s16, [#allocation10], %s1572_s13, %s1572_s13, %s1573_s14  }
   0xa   :  { %s1575_s4 = smov [#allocation3]   ;;  %s1576_s23 = smov [#allocation8]  }
   0xb   :  { %s23_s22 = sshll.u32 %s1575_s4, 4  ;;  %s49_s24 = sshll.u32 %s1576_s23, 4  ;;  %s24_s22 = int_to_ptr.vmem [resolvable:$true] %s23_s22  ;;  %s50_s24 = int_to_ptr.vmem [resolvable:$true] %s49_s24 }
   0xc   :  { %29 = dma.hbm_to_vmem [thread:$0]  %s22_s19, 128, %s24_s22, [#allocation4], %s1572_s13, %s1572_s13, %s1573_s14  }
   0xd   :  { %s77_s0 = sshll.u32 %s1918_s6, 4  ;;  %s1577_s27 = smov [#allocation11]   ;;  %s78_s0 = int_to_ptr.hbm [resolvable:$true] %s77_s0 }
   0xe   :  { %55 = dma.hbm_to_vmem [thread:$0]  %s48_s21, 256, %s50_s24, [#allocation7], %s1572_s13, %s1572_s13, %s1573_s14  }
   0xf   :  { %s79_s28 = sshll.u32 %s1577_s27, 4  ;;  %s80_s28 = int_to_ptr.vmem [resolvable:$true] %s79_s28 }
  0x10   :  { %85 = dma.hbm_to_vmem [thread:$0]  %s78_s0, 256, %s80_s28, [#allocation10], %s1572_s13, %s1572_s13, %s1573_s14  }
  0x11   :  { %1563 = dma.done.wait [#allocation4], 128  }
  0x12   :  { %1564 = vsyncadd [#allocation4], 4294967168 }
  0x13   :  { %1565 = dma.done.wait [#allocation7], 384  }
  0x14   :  { %1566 = vsyncadd [#allocation7], 4294966912 }
  0x15   :  { %1567 = dma.done.wait [#allocation10], 512  }
  0x16   :  { %1568 = vsyncadd [#allocation10], 4294966784  ;;  %v1317_v0 = vld [vmem:[#allocation8 + $0x8] sm:$0xff]  ;;  %v1319_v1 = vld [vmem:[#allocation9 + $0x8] sm:$0xff]  ;;  %vm138_vm0 = vcmask 261120   ;;  %vm202_vm1 = vcmask 31744  }
  0x17   :  { %v1316_v2 = vld [vmem:[#allocation8] sm:$0xff]  ;;  %148 = vmatpush.bf16.msra.mxu0 %v1317_v0  ;;  %190 = vmatpush.bf16.msra.mxu1 %v1319_v1  ;;  %v1318_v3 = vld [vmem:[#allocation9] sm:$0xff]  ;;  %v1315_v5 = vld [vmem:[#allocation6] sm:$0xff]  ;;  %s1580_s9 = smov 116   ;;  %s1581_s10 = smov 112   ;;  %vm241_vm2 = vcmask 64512  }
  0x18   :  { %v1314_v4 = vld [vmem:[#allocation3] sm:$0xff]  ;;  %v1352_v6 = vld [vmem:[%s1915_s3] ss:$0 sm:$0xff]  ;;  %s1578_s3 = smov 120   ;;  %s1582_s11 = smov 108   ;;  %vm270_vm3 = vcmask 1043456  }
  0x19   :  { %v1353_v7 = vld [vmem:[%s1917_s5] ss:$0 sm:$0xff]  ;;  %s1579_s5 = smov 124   ;;  %s1583_s12 = smov 104   ;;  %vm443_vm4 = vcmask 64544   ;;  %vm566_vm5 = vcmask 97344  }
  0x1a   :  { %s1584_s13 = smov 100   ;;  %s1585_s15 = smov 88   ;;  %vm689_vm6 = vcmask 130144   ;;  %vm812_vm7 = vcmask 162944   ;;  %vm935_vm8 = vcmask 195744   ;;  %vm1058_vm9 = vcmask 228544  }
  0x1b   :  { %149 = vmatpush.bf16.msra.mxu0 %v1316_v2  ;;  %191 = vmatpush.bf16.msra.mxu1 %v1318_v3  ;;  %s1586_s16 = smov 92   ;;  %s1587_s17 = smov 96   ;;  %vm1181_vm10 = vcmask 261344  }
  0x1c   :  { %s1588_s18 = smov 84   ;;  %s1589_s19 = smov 80  }
  0x1d   :  { %s1590_s1 = smov 76   ;;  %s1591_s20 = smov 72  }
  0x1e   :  { %1259 = vmatmul.msk.bf16.vlgmr.msra.gmra.mxu0 %vm138_vm0, %v1314_v4  ;;  %1272 = vmatmul.msk.bf16.vlgmr.msra.gmra.mxu1 %vm138_vm0, %v1315_v5  ;;  %s1592_s21 = smov 68   ;;  %s1593_s4 = smov 8  }
  0x1f   :  { %s1594_s22 = smov 12   ;;  %s1596_s23 = smov 20  }
  0x20   :  { %s1597_s24 = smov 24   ;;  %s1598_s25 = smov 28  }
  0x21   :  { %s1599_s27 = smov [#allocation12]   ;;  %s1232_s29 = sshll.u32 %s1920_s8, 4  ;;  %s1233_s29 = int_to_ptr.hbm [resolvable:$true] %s1232_s29 }
  0x22   :  { %s1230_s28 = sshll.u32 %s1599_s27, 4  ;;  %s1600_s30 = smov 128   ;;  %s1231_s28 = int_to_ptr.vmem [resolvable:$true] %s1230_s28 }
  0x9b   :  { %v151_v8 = vpop.f32.mrf.mxu0  ;;  %v193_v9 = vpop.f32.mrf.mxu1 }
  0x9c   :  { %v152_v10 = vadd.f32 %v1352_v6, %v151_v8  ;;  %v194_v11 = vadd.f32 %v1353_v7, %v193_v9 }
  0x9e   :  { %v198_v12 = vpack.c.bf16 %v152_v10, %v152_v10  ;;  %v200_v13 = vpack.c.bf16 %v194_v11, %v194_v11 }
  0xa0   :  { %v318_v14 = vunpack.c.l.b16 %v198_v12  ;;  %v263_v15 = vunpack.c.l.b16 %v200_v13  ;;  %v207_v16 = vsel %vm202_vm1, %v200_v13, 0 }
  0xa1   :  { %216 = vmatpush.bf16.xpose.msra.mxu2 %v207_v16 }
  0xa2   :  { %v319_v17 = vpack.c.b16 %v318_v14, %v318_v14  ;;  %v1675_v18 = vpack.c.b16 %v263_v15, %v263_v15 }
  0xa3   :  { %v153_v19 = vpop.f32.mrf.mxu0  ;;  %v195_v20 = vpop.f32.mrf.mxu1 }
  0xa4   :  { %v154_v21 = vadd.f32 %v1352_v6, %v153_v19  ;;  %v196_v22 = vadd.f32 %v1353_v7, %v195_v20  ;;  %448 = vrot.lane.b32.xlu2 %v1675_v18, %s1578_s3  ;;  %322 = vrot.lane.b32.xlu0 %v1675_v18, %s1579_s5 }
  0xa5   :  { %320 = vrot.lane.b32.xlu1 %v319_v17, %s1579_s5 }
  0xa6   :  { %v199_v23 = vpack.c.bf16 %v154_v21, %v154_v21  ;;  %v201_v24 = vpack.c.bf16 %v196_v22, %v196_v22 }
  0xa8   :  { %v344_v25 = vunpack.c.l.b16 %v199_v23  ;;  %v288_v26 = vunpack.c.l.b16 %v201_v24  ;;  %1273 = vmatmul.msk.bf16.vlgmr.msra.gmra.mxu2 %vm202_vm1, %v198_v12  ;;  %v226_v27 = vsel %vm202_vm1, %v201_v24, 0 }
  0xa9   :  { %235 = vmatpush.bf16.xpose.msra.mxu3 %v226_v27 }
  0xaa   :  { %v345_v28 = vpack.c.b16 %v344_v25, %v344_v25  ;;  %v1681_v29 = vpack.c.b16 %v288_v26, %v288_v26 }
  0xac   :  { %471 = vrot.lane.b32.xlu2 %v1681_v29, %s1578_s3  ;;  %348 = vrot.lane.b32.xlu0 %v1681_v29, %s1579_s5 }
  0xad   :  { %346 = vrot.lane.b32.xlu1 %v345_v28, %s1579_s5 }
  0xb0   :  { %1274 = vmatmul.msk.bf16.vlgmr.msra.gmra.mxu3 %vm202_vm1, %v199_v23 }
  0xb4   :  { %571 = vrot.lane.b32.xlu2 %v1675_v18, %s1580_s9  ;;  %446 = vrot.lane.b32.xlu0 %v319_v17, %s1578_s3 }
  0xb5   :  { %469 = vrot.lane.b32.xlu1 %v345_v28, %s1578_s3 }
  0xbc   :  { %592 = vrot.lane.b32.xlu2 %v345_v28, %s1580_s9  ;;  %594 = vrot.lane.b32.xlu0 %v1681_v29, %s1580_s9 }
  0xbd   :  { %569 = vrot.lane.b32.xlu1 %v319_v17, %s1580_s9 }
  0xc4   :  { %692 = vrot.lane.b32.xlu2 %v319_v17, %s1581_s10  ;;  %694 = vrot.lane.b32.xlu0 %v1675_v18, %s1581_s10 }
  0xc5   :  { %717 = vrot.lane.b32.xlu1 %v1681_v29, %s1581_s10 }
  0xcc   :  { %840 = vrot.lane.b32.xlu2 %v1681_v29, %s1582_s11  ;;  %715 = vrot.lane.b32.xlu0 %v345_v28, %s1581_s10 }
  0xcd   :  { %817 = vrot.lane.b32.xlu1 %v1675_v18, %s1582_s11 }
  0xd4   :  { %940 = vrot.lane.b32.xlu2 %v1675_v18, %s1583_s12  ;;  %815 = vrot.lane.b32.xlu0 %v319_v17, %s1582_s11 }
  0xd5   :  { %838 = vrot.lane.b32.xlu1 %v345_v28, %s1582_s11 }
  0xdc   :  { %961 = vrot.lane.b32.xlu2 %v345_v28, %s1583_s12  ;;  %963 = vrot.lane.b32.xlu0 %v1681_v29, %s1583_s12 }
  0xdd   :  { %938 = vrot.lane.b32.xlu1 %v319_v17, %s1583_s12 }
  0xe4   :  { %1061 = vrot.lane.b32.xlu2 %v319_v17, %s1584_s13  ;;  %1063 = vrot.lane.b32.xlu0 %v1675_v18, %s1584_s13 }
  0xe5   :  { %1086 = vrot.lane.b32.xlu1 %v1681_v29, %s1584_s13 }
  0xec   :  { %512 = vrot.lane.b32.xlu2 %v1675_v18, %s1585_s15  ;;  %1084 = vrot.lane.b32.xlu0 %v345_v28, %s1584_s13 }
  0xed   :  { %389 = vrot.lane.b32.xlu1 %v1675_v18, %s1586_s16 }
  0xf4   :  { %410 = vrot.lane.b32.xlu2 %v1681_v29, %s1586_s16  ;;  %265 = vrot.lane.b32.xlu0 %v1675_v18, %s1587_s17 }
  0xf5   :  { %635 = vrot.lane.b32.xlu1 %v1675_v18, %s1588_s18 }
  0xfc   :  { %656 = vrot.lane.b32.xlu2 %v1681_v29, %s1588_s18  ;;  %758 = vrot.lane.b32.xlu0 %v1675_v18, %s1589_s19 }
  0xfe   :  { %v449_v30 = vpop.permute.xlu2 %448 }
  0xff   :  { %v454_v35 = vsel %vm202_vm1, %v449_v30, 0 }
 0x104   :  { %779 = vrot.lane.b32.xlu2 %v1681_v29, %s1589_s19  ;;  %290 = vrot.lane.b32.xlu0 %v1681_v29, %s1587_s17 }
 0x106   :  { %v472_v31 = vpop.permute.xlu2 %471 }
 0x107   :  { %v477_v41 = vsel %vm202_vm1, %v472_v31, 0 }
 0x10c   :  { %533 = vrot.lane.b32.xlu0 %v1681_v29, %s1585_s15 }
 0x10e   :  { %v572_v36 = vpop.permute.xlu2 %571 }
 0x10f   :  { %v577_v38 = vsel %vm202_vm1, %v572_v36, 0 }
 0x116   :  { %v323_v32 = vpop.permute.xlu0 %322  ;;  %v593_v46 = vpop.permute.xlu2 %592 }
 0x117   :  { %v321_v33 = vpop.permute.xlu1 %320  ;;  %v328_v34 = vsel %vm202_vm1, %v323_v32, 0 }
 0x118   :  { %337 = vmatpush.bf16.xpose.msrb.mxu2 %v328_v34 }
 0x11e   :  { %v349_v37 = vpop.permute.xlu0 %348  ;;  %v693_v56 = vpop.permute.xlu2 %692 }
 0x11f   :  { %v347_v39 = vpop.permute.xlu1 %346  ;;  %1277 = vmatmul.msk.bf16.vlgmr.msrb.gmra.mxu2 %vm202_vm1, %v321_v33  ;;  %v354_v40 = vsel %vm202_vm1, %v349_v37, 0 }
 0x120   :  { %463 = vmatpush.bf16.xpose.msra.mxu2 %v454_v35  ;;  %363 = vmatpush.bf16.xpose.msrb.mxu3 %v354_v40 }
 0x126   :  { %v447_v42 = vpop.permute.xlu0 %446  ;;  %v841_v62 = vpop.permute.xlu2 %840 }
 0x127   :  { %v470_v43 = vpop.permute.xlu1 %469  ;;  %1278 = vmatmul.msk.bf16.vlgmr.msrb.gmra.mxu3 %vm202_vm1, %v347_v39  ;;  %v846_v0 = vsel %vm202_vm1, %v841_v62, 0 }
 0x128   :  { %586 = vmatpush.bf16.xpose.msrb.mxu2 %v577_v38  ;;  %486 = vmatpush.bf16.xpose.msra.mxu3 %v477_v41 }
 0x12b   :  { %v1713_v44 = vpop.f32.mrf.mxu2 }
 0x12c   :  { %v242_v45 = vsel %vm241_vm2, %v1713_v44, -inf }
 0x12d   :  { %243 = vmax.xlane.f32.xlu1 %v242_v45 }
 0x12e   :  { %v595_v47 = vpop.permute.xlu0 %594  ;;  %v941_v2 = vpop.permute.xlu2 %940 }
 0x12f   :  { %v600_v48 = vsel %vm202_vm1, %v595_v47, 0  ;;  %v570_v49 = vpop.permute.xlu1 %569  ;;  %1281 = vmatmul.msk.bf16.vlgmr.msra.gmra.mxu2 %vm202_vm1, %v447_v42  ;;  %v946_v4 = vsel %vm202_vm1, %v941_v2, 0 }
 0x130   :  { %609 = vmatpush.bf16.xpose.msrb.mxu3 %v600_v48 }
 0x133   :  { %v1719_v50 = vpop.f32.mrf.mxu3  ;;  %v220_v51 = vpop.f32.mrf.mxu2 }
 0x134   :  { %v245_v52 = vsel %vm241_vm2, %v1719_v50, -inf }
 0x135   :  { %246 = vmax.xlane.f32.xlu2 %v245_v52 }
 0x136   :  { %v695_v53 = vpop.permute.xlu0 %694  ;;  %v962_v7 = vpop.permute.xlu2 %961 }
 0x137   :  { %v700_v54 = vsel %vm202_vm1, %v695_v53, 0  ;;  %v718_v55 = vpop.permute.xlu1 %717  ;;  %1282 = vmatmul.msk.bf16.vlgmr.msra.gmra.mxu3 %vm202_vm1, %v470_v43 }
 0x138   :  { %v723_v57 = vsel %vm202_vm1, %v718_v55, 0  ;;  %709 = vmatpush.bf16.xpose.msra.mxu2 %v700_v54 }
 0x139   :  { %732 = vmatpush.bf16.xpose.msra.mxu3 %v723_v57 }
 0x13b   :  { %v239_v58 = vpop.f32.mrf.mxu3 }
 0x13e   :  { %v716_v59 = vpop.permute.xlu0 %715  ;;  %v1062_v12 = vpop.permute.xlu2 %1061 }
 0x13f   :  { %v818_v60 = vpop.permute.xlu1 %817  ;;  %1285 = vmatmul.msk.bf16.vlgmr.msrb.gmra.mxu2 %vm202_vm1, %v570_v49 }
 0x140   :  { %v823_v61 = vsel %vm202_vm1, %v818_v60, 0 }
 0x141   :  { %832 = vmatpush.bf16.xpose.msrb.mxu2 %v823_v61 }
 0x146   :  { %v816_v63 = vpop.permute.xlu0 %815  ;;  %v513_v19 = vpop.permute.xlu2 %512 }
 0x147   :  { %v839_v1 = vpop.permute.xlu1 %838  ;;  %1286 = vmatmul.msk.bf16.vlgmr.msrb.gmra.mxu3 %vm202_vm1, %v593_v46  ;;  %v518_v42 = vsel %vm270_vm3, %v513_v19, 0 }
 0x148   :  { %855 = vmatpush.bf16.xpose.msrb.mxu3 %v846_v0 }
 0x14e   :  { %v964_v3 = vpop.permute.xlu0 %963  ;;  %v411_v21 = vpop.permute.xlu2 %410 }
 0x14f   :  { %1289 = vmatmul.msk.bf16.vlgmr.msra.gmra.mxu2 %vm202_vm1, %v693_v56  ;;  %v939_v5 = vpop.permute.xlu1 %938  ;;  %v969_v8 = vsel %vm202_vm1, %v964_v3, 0  ;;  %v416_v24 = vsel %vm270_vm3, %v411_v21, 0 }
 0x150   :  { %955 = vmatpush.bf16.xpose.msra.mxu2 %v946_v4 }
 0x156   :  { %v1064_v6 = vpop.permute.xlu0 %1063  ;;  %v1748_v25 = vpop.permute.xlu2 %656 }
 0x157   :  { %1290 = vmatmul.msk.bf16.vlgmr.msra.gmra.mxu3 %vm202_vm1, %v716_v59  ;;  %v1087_v9 = vpop.permute.xlu1 %1086  ;;  %v1069_v11 = vsel %vm202_vm1, %v1064_v6, 0 }
 0x158   :  { %978 = vmatpush.bf16.xpose.msra.mxu3 %v969_v8  ;;  %v1092_v15 = vsel %vm202_vm1, %v1087_v9, 0 }
 0x15e   :  { %v1085_v10 = vpop.permute.xlu0 %1084  ;;  %v1752_v27 = vpop.permute.xlu2 %779 }
 0x15f   :  { %1293 = vmatmul.msk.bf16.vlgmr.msrb.gmra.mxu2 %vm202_vm1, %v816_v63  ;;  %v390_v13 = vpop.permute.xlu1 %389 }
 0x160   :  { %1078 = vmatpush.bf16.xpose.msrb.mxu2 %v1069_v11  ;;  %v395_v17 = vsel %vm270_vm3, %v390_v13, 0 }
 0x166   :  { %v266_v14 = vpop.permute.xlu0 %265 }
 0x167   :  { %1294 = vmatmul.msk.bf16.vlgmr.msrb.gmra.mxu3 %vm202_vm1, %v839_v1  ;;  %v272_v16 = vsel %vm270_vm3, %v266_v14, 0  ;;  %v1750_v26 = vpop.permute.xlu1 %635 }
 0x168   :  { %1101 = vmatpush.bf16.xpose.msrb.mxu3 %v1092_v15  ;;  %281 = vmatpush.bf16.msrb.mxu0 %v272_v16 }
 0x16c   :  { %404 = vmatpush.bf16.msra.mxu0 %v395_v17 }
 0x16e   :  { %v1740_v20 = vpop.permute.xlu0 %758 }
 0x16f   :  { %1297 = vmatmul.msk.bf16.vlgmr.msra.gmra.mxu2 %vm202_vm1, %v939_v5 }
 0x176   :  { %v291_v22 = vpop.permute.xlu0 %290 }
 0x177   :  { %1298 = vmatmul.msk.bf16.vlgmr.msra.gmra.mxu3 %vm202_vm1, %v962_v7  ;;  %v296_v23 = vsel %vm270_vm3, %v291_v22, 0 }
 0x178   :  { %305 = vmatpush.bf16.msrb.mxu1 %v296_v23 }
 0x17c   :  { %425 = vmatpush.bf16.msra.mxu1 %v416_v24 }
 0x17e   :  { %v534_v46 = vpop.permute.xlu0 %533 }
 0x17f   :  { %1301 = vmatmul.msk.bf16.vlgmr.msrb.gmra.mxu2 %vm202_vm1, %v1062_v12  ;;  %v539_v49 = vsel %vm270_vm3, %v534_v46, 0  ;;  %v764_v46 = vsel %vm270_vm3, %v1740_v20, 0 }
 0x187   :  { %1302 = vmatmul.msk.bf16.vlgmr.msrb.gmra.mxu3 %vm202_vm1, %v1085_v10 }
 0x1a0   :  { %v244_v28 = vpop.xlane.xlu1 %243 }
 0x1a1   :  { %v248_v30 = vsub.f32 %v1713_v44, %v244_v28 }
 0x1a2   :  { %v1755_v31 = vpop.f32.mrf.mxu2 }
 0x1a3   :  { %v250_v32 = vmul.f32 1.442695, %v248_v30  ;;  %v369_v33 = vsel %vm241_vm2, %v1755_v31, -inf }
 0x1a4   :  { %370 = vmax.xlane.f32.xlu0 %v369_v33  ;;  %v641_v33 = vsel %vm270_vm3, %v1750_v26, 0 }
 0x1a5   :  { %1355 = vpow2.f32 %v250_v32 }
 0x1a8   :  { %v247_v34 = vpop.xlane.xlu2 %246 }
 0x1a9   :  { %v249_v35 = vsub.f32 %v1719_v50, %v247_v34 }
 0x1aa   :  { %v341_v36 = vpop.f32.mrf.mxu2  ;;  %v1760_v37 = vpop.f32.mrf.mxu3 }
 0x1ab   :  { %v1762_v38 = vpop.eup %1355  ;;  %v252_v39 = vmul.f32 1.442695, %v249_v35  ;;  %v372_v40 = vsel %vm241_vm2, %v1760_v37, -inf }
 0x1ac   :  { %373 = vmax.xlane.f32.xlu2 %v372_v40  ;;  %v260_v41 = vpack.c.bf16 %v1762_v38, %v1762_v38 }
 0x1ad   :  { %1357 = vpow2.f32 %v252_v39 }
 0x1ae   :  { %1275 = vmatmul.msk.bf16.vlgmr.msrb.gmra.mxu0 %vm241_vm2, %v260_v41 }
 0x1af   :  { %527 = vmatpush.bf16.msrb.mxu0 %v518_v42 }
 0x1b2   :  { %v367_v43 = vpop.f32.mrf.mxu3  ;;  %v1770_v44 = vpop.f32.mrf.mxu2 }
 0x1b3   :  { %v1772_v45 = vpop.eup %1357  ;;  %v492_v47 = vsel %vm241_vm2, %v1770_v44, -inf }
 0x1b4   :  { %493 = vmax.xlane.f32.xlu0 %v492_v47  ;;  %v261_v48 = vpack.c.bf16 %v1772_v45, %v1772_v45 }
 0x1b6   :  { %1276 = vmatmul.msk.bf16.vlgmr.msrb.gmra.mxu1 %vm241_vm2, %v261_v48 }
 0x1b7   :  { %548 = vmatpush.bf16.msrb.mxu1 %v539_v49 }
 0x1ba   :  { %v467_v50 = vpop.f32.mrf.mxu2  ;;  %v1780_v51 = vpop.f32.mrf.mxu3 }
 0x1bb   :  { %v495_v52 = vsel %vm241_vm2, %v1780_v51, -inf }
 0x1bc   :  { %496 = vmax.xlane.f32.xlu1 %v495_v52 }
 0x1c2   :  { %v490_v53 = vpop.f32.mrf.mxu3  ;;  %v1784_v54 = vpop.f32.mrf.mxu2 }
 0x1c3   :  { %v615_v4 = vsel %vm241_vm2, %v1784_v54, -inf }
 0x1c4   :  { %902 = vrot.lane.b32.xlu2 %v1681_v29, %s1590_s1 }
 0x1ca   :  { %v590_v55 = vpop.f32.mrf.mxu2  ;;  %v1787_v56 = vpop.f32.mrf.mxu3 }
 0x1cb   :  { %v618_v57 = vsel %vm241_vm2, %v1787_v56, -inf  ;;  %v257_v55 = vsel %vm241_vm2, %v1772_v45, 0.0 }
 0x1cc   :  { %619 = vmax.xlane.f32.xlu0 %v618_v57 }
 0x1d2   :  { %v613_v58 = vpop.f32.mrf.mxu3  ;;  %v1791_v59 = vpop.f32.mrf.mxu2 }
 0x1d3   :  { %v738_v11 = vsel %vm241_vm2, %v1791_v59, -inf }
 0x1d5   :  { %881 = vrot.lane.b32.xlu1 %v1675_v18, %s1590_s1 }
 0x1da   :  { %v713_v60 = vpop.f32.mrf.mxu2  ;;  %v1794_v61 = vpop.f32.mrf.mxu3 }
 0x1db   :  { %v741_v62 = vsel %vm241_vm2, %v1794_v61, -inf }
 0x1dc   :  { %742 = vmax.xlane.f32.xlu0 %v741_v62 }
 0x1e2   :  { %v736_v63 = vpop.f32.mrf.mxu3  ;;  %v1798_v0 = vpop.f32.mrf.mxu2 }
 0x1e3   :  { %v861_v7 = vsel %vm241_vm2, %v1798_v0, -inf }
 0x1ea   :  { %v836_v1 = vpop.f32.mrf.mxu2  ;;  %v1800_v2 = vpop.f32.mrf.mxu3 }
 0x1eb   :  { %v864_v3 = vsel %vm241_vm2, %v1800_v2, -inf }
 0x1ec   :  { %865 = vmax.xlane.f32.xlu0 %v864_v3 }
 0x1ed   :  { %616 = vmax.xlane.f32.xlu2 %v615_v4  ;;  %v254_v4 = vsel %vm241_vm2, %v1762_v38, 0.0 }
 0x1f2   :  { %v859_v5 = vpop.f32.mrf.mxu3  ;;  %v1806_v6 = vpop.f32.mrf.mxu2 }
 0x1f3   :  { %v984_v14 = vsel %vm241_vm2, %v1806_v6, -inf }
 0x1f5   :  { %862 = vmax.xlane.f32.xlu2 %v861_v7 }
 0x1fa   :  { %v959_v8 = vpop.f32.mrf.mxu2  ;;  %v1810_v9 = vpop.f32.mrf.mxu3 }
 0x1fb   :  { %v987_v10 = vsel %vm241_vm2, %v1810_v9, -inf }
 0x1fc   :  { %988 = vmax.xlane.f32.xlu0 %v987_v10 }
 0x1ff   :  { %739 = vmax.xlane.f32.xlu1 %v738_v11 }
 0x202   :  { %v982_v12 = vpop.f32.mrf.mxu3  ;;  %v1816_v13 = vpop.f32.mrf.mxu2 }
 0x207   :  { %985 = vmax.xlane.f32.xlu1 %v984_v14 }
 0x20a   :  { %v1082_v15 = vpop.f32.mrf.mxu2  ;;  %v1820_v16 = vpop.f32.mrf.mxu3 }
 0x20b   :  { %v1110_v47 = vsel %vm241_vm2, %v1820_v16, -inf }
 0x20d   :  { %1025 = vrot.lane.b32.xlu2 %v1681_v29, %s1591_s20 }
 0x210   :  { %1004 = vrot.lane.b32.xlu0 %v1675_v18, %s1591_s20 }
 0x212   :  { %v1105_v17 = vpop.f32.mrf.mxu3 }
 0x217   :  { %v371_v19 = vpop.xlane.xlu0 %370 }
 0x218   :  { %v375_v21 = vsub.f32 %v1755_v31, %v371_v19 }
 0x21a   :  { %v377_v22 = vmul.f32 1.442695, %v375_v21 }
 0x21c   :  { %1359 = vpow2.f32 %v377_v22 }
 0x21f   :  { %v374_v23 = vpop.xlane.xlu2 %373 }
 0x220   :  { %v376_v24 = vsub.f32 %v1760_v37, %v374_v23  ;;  %1127 = vrot.lane.b32.xlu1 %v1675_v18, %s1592_s21  ;;  %v662_v18 = vsel %vm270_vm3, %v1748_v25, 0  ;;  %v1107_v25 = vsel %vm241_vm2, %v1816_v13, -inf }
 0x222   :  { %v1360_v28 = vpop.eup %1359  ;;  %v379_v30 = vmul.f32 1.442695, %v376_v24 }
 0x223   :  { %v387_v32 = vpack.c.bf16 %v1360_v28, %v1360_v28  ;;  %v381_v20 = vsel %vm241_vm2, %v1360_v28, 0.0 }
 0x224   :  { %1361 = vpow2.f32 %v379_v30 }
 0x225   :  { %1279 = vmatmul.msk.bf16.vlgmr.msra.gmra.mxu0 %vm241_vm2, %v387_v32 }
 0x226   :  { %650 = vmatpush.bf16.msra.mxu0 %v641_v33 }
 0x227   :  { %v494_v34 = vpop.xlane.xlu0 %493  ;;  %v903_v62 = vpop.permute.xlu2 %902 }
 0x228   :  { %v498_v31 = vsub.f32 %v1770_v44, %v494_v34  ;;  %1148 = vrot.lane.b32.xlu1 %v1681_v29, %s1592_s21  ;;  %v908_v1 = vsel %vm270_vm3, %v903_v62, 0 }
 0x22a   :  { %v1362_v35 = vpop.eup %1361  ;;  %v500_v36 = vmul.f32 1.442695, %v498_v31 }
 0x22b   :  { %v388_v37 = vpack.c.bf16 %v1362_v35, %v1362_v35  ;;  %v1832_v39 = vpop.f32.mrf.mxu0 }
 0x22c   :  { %1363 = vpow2.f32 %v500_v36 }
 0x22d   :  { %1280 = vmatmul.msk.bf16.vlgmr.msra.gmra.mxu1 %vm241_vm2, %v388_v37 }
 0x22e   :  { %671 = vmatpush.bf16.msra.mxu1 %v662_v18 }
 0x22f   :  { %v497_v26 = vpop.xlane.xlu1 %496 }
 0x230   :  { %v499_v40 = vsub.f32 %v1780_v51, %v497_v26  ;;  %v785_v51 = vsel %vm270_vm3, %v1752_v27, 0  ;;  %v384_v27 = vsel %vm241_vm2, %v1362_v35, 0.0 }
 0x232   :  { %v1364_v41 = vpop.eup %1363  ;;  %v502_v42 = vmul.f32 1.442695, %v499_v40 }
 0x233   :  { %v510_v43 = vpack.c.bf16 %v1364_v41, %v1364_v41  ;;  %v285_v44 = vpop.f32.mrf.mxu0  ;;  %v1838_v29 = vpop.f32.mrf.mxu1  ;;  %v504_v7 = vsel %vm241_vm2, %v1364_v41, 0.0 }
 0x234   :  { %1365 = vpow2.f32 %v502_v42 }
 0x235   :  { %1283 = vmatmul.msk.bf16.vlgmr.msrb.gmra.mxu0 %vm241_vm2, %v510_v43 }
 0x236   :  { %773 = vmatpush.bf16.msrb.mxu0 %v764_v46  ;;  %1108 = vmax.xlane.f32.xlu2 %v1107_v25 }
 0x23a   :  { %v1366_v48 = vpop.eup %1365  ;;  %1111 = vmax.xlane.f32.xlu0 %v1110_v47 }
 0x23b   :  { %v511_v49 = vpack.c.bf16 %v1366_v48, %v1366_v48  ;;  %v309_v50 = vpop.f32.mrf.mxu1  ;;  %v507_v58 = vsel %vm241_vm2, %v1366_v48, 0.0 }
 0x23d   :  { %1284 = vmatmul.msk.bf16.vlgmr.msrb.gmra.mxu1 %vm241_vm2, %v511_v49 }
 0x23e   :  { %794 = vmatpush.bf16.msrb.mxu1 %v785_v51  ;;  %382 = vadd.xlane.f32.xlu2 %v381_v20 }
 0x23f   :  { %v620_v52 = vpop.xlane.xlu0 %619 }
 0x240   :  { %v622_v53 = vsub.f32 %v1787_v56, %v620_v52 }
 0x242   :  { %v625_v57 = vmul.f32 1.442695, %v622_v53  ;;  %258 = vadd.xlane.f32.xlu0 %v257_v55 }
 0x244   :  { %1367 = vpow2.f32 %v625_v57 }
 0x246   :  { %508 = vadd.xlane.f32.xlu2 %v507_v58 }
 0x247   :  { %v882_v22 = vpop.permute.xlu1 %881 }
 0x24a   :  { %v1368_v60 = vpop.eup %1367  ;;  %385 = vadd.xlane.f32.xlu0 %v384_v27 }
 0x24b   :  { %v634_v63 = vpack.c.bf16 %v1368_v60, %v1368_v60  ;;  %v630_v56 = vsel %vm241_vm2, %v1368_v60, 0.0 }
 0x24d   :  { %1288 = vmatmul.msk.bf16.vlgmr.msra.gmra.mxu1 %vm241_vm2, %v634_v63 }
 0x24e   :  { %917 = vmatpush.bf16.msra.mxu1 %v908_v1  ;;  %631 = vadd.xlane.f32.xlu2 %v630_v56 }
 0x24f   :  { %v743_v45 = vpop.xlane.xlu0 %742 }
 0x250   :  { %v745_v3 = vsub.f32 %v1794_v61, %v743_v45 }
 0x252   :  { %v748_v5 = vmul.f32 1.442695, %v745_v3  ;;  %255 = vadd.xlane.f32.xlu1 %v254_v4 }
 0x254   :  { %1369 = vpow2.f32 %v748_v5 }
 0x25a   :  { %v1370_v8 = vpop.eup %1369  ;;  %505 = vadd.xlane.f32.xlu1 %v504_v7 }
 0x25b   :  { %v757_v10 = vpack.c.bf16 %v1370_v8, %v1370_v8  ;;  %v753_v11 = vsel %vm241_vm2, %v1370_v8, 0.0 }
 0x25c   :  { %754 = vadd.xlane.f32.xlu2 %v753_v11 }
 0x25d   :  { %1292 = vmatmul.msk.bf16.vlgmr.msrb.gmra.mxu1 %vm241_vm2, %v757_v10 }
 0x25f   :  { %v866_v12 = vpop.xlane.xlu0 %865 }
 0x260   :  { %v868_v14 = vsub.f32 %v1800_v2, %v866_v12  ;;  %v617_v61 = vpop.xlane.xlu2 %616 }
 0x261   :  { %v621_v15 = vsub.f32 %v1784_v54, %v617_v61  ;;  %v887_v54 = vsel %vm270_vm3, %v882_v22, 0 }
 0x262   :  { %v871_v38 = vmul.f32 1.442695, %v868_v14 }
 0x263   :  { %v623_v17 = vmul.f32 1.442695, %v621_v15 }
 0x264   :  { %1371 = vpow2.f32 %v871_v38 }
 0x265   :  { %1373 = vpow2.f32 %v623_v17 }
 0x268   :  { %v863_v19 = vpop.xlane.xlu2 %862 }
 0x269   :  { %v867_v18 = vsub.f32 %v1798_v0, %v863_v19 }
 0x26a   :  { %v1372_v21 = vpop.eup %1371 }
 0x26b   :  { %v1374_v23 = vpop.eup %1373  ;;  %v880_v24 = vpack.c.bf16 %v1372_v21, %v1372_v21  ;;  %v876_v28 = vsel %vm241_vm2, %v1372_v21, 0.0  ;;  %v869_v40 = vmul.f32 1.442695, %v867_v18 }
 0x26c   :  { %v633_v30 = vpack.c.bf16 %v1374_v23, %v1374_v23  ;;  %877 = vadd.xlane.f32.xlu2 %v876_v28  ;;  %v627_v32 = vsel %vm241_vm2, %v1374_v23, 0.0 }
 0x26d   :  { %1296 = vmatmul.msk.bf16.vlgmr.msra.gmra.mxu1 %vm241_vm2, %v880_v24  ;;  %628 = vadd.xlane.f32.xlu0 %v627_v32 }
 0x26e   :  { %1287 = vmatmul.msk.bf16.vlgmr.msra.gmra.mxu0 %vm241_vm2, %v633_v30 }
 0x26f   :  { %896 = vmatpush.bf16.msra.mxu0 %v887_v54  ;;  %v989_v2 = vpop.xlane.xlu0 %988 }
 0x270   :  { %v991_v33 = vsub.f32 %v1810_v9, %v989_v2  ;;  %v1026_v34 = vpop.permute.xlu2 %1025 }
 0x271   :  { %v1031_v31 = vsel %vm270_vm3, %v1026_v34, 0 }
 0x272   :  { %v994_v35 = vmul.f32 1.442695, %v991_v33  ;;  %v740_v36 = vpop.xlane.xlu1 %739  ;;  %1040 = vmatpush.bf16.msrb.mxu1 %v1031_v31 }
 0x273   :  { %v744_v37 = vsub.f32 %v1791_v59, %v740_v36 }
 0x274   :  { %1375 = vpow2.f32 %v994_v35 }
 0x275   :  { %v746_v26 = vmul.f32 1.442695, %v744_v37 }
 0x277   :  { %1377 = vpow2.f32 %v746_v26 }
 0x278   :  { %1379 = vpow2.f32 %v869_v40 }
 0x27a   :  { %v1376_v41 = vpop.eup %1375  ;;  %v986_v42 = vpop.xlane.xlu1 %985 }
 0x27b   :  { %v1003_v43 = vpack.c.bf16 %v1376_v41, %v1376_v41  ;;  %v999_v44 = vsel %vm241_vm2, %v1376_v41, 0.0  ;;  %v990_v46 = vsub.f32 %v1806_v6, %v986_v42 }
 0x27c   :  { %1000 = vadd.xlane.f32.xlu2 %v999_v44 }
 0x27d   :  { %v1378_v9 = vpop.eup %1377  ;;  %1300 = vmatmul.msk.bf16.vlgmr.msrb.gmra.mxu1 %vm241_vm2, %v1003_v43  ;;  %v992_v0 = vmul.f32 1.442695, %v990_v46 }
 0x27e   :  { %v756_v25 = vpack.c.bf16 %v1378_v9, %v1378_v9  ;;  %v750_v59 = vsel %vm241_vm2, %v1378_v9, 0.0  ;;  %v1380_v48 = vpop.eup %1379 }
 0x27f   :  { %751 = vadd.xlane.f32.xlu0 %v750_v59  ;;  %1381 = vpow2.f32 %v992_v0  ;;  %v873_v50 = vsel %vm241_vm2, %v1380_v48, 0.0  ;;  %v879_v6 = vpack.c.bf16 %v1380_v48, %v1380_v48 }
 0x280   :  { %1291 = vmatmul.msk.bf16.vlgmr.msrb.gmra.mxu0 %vm241_vm2, %v756_v25 }
 0x282   :  { %v1005_v47 = vpop.permute.xlu0 %1004 }
 0x283   :  { %v1010_v49 = vsel %vm270_vm3, %v1005_v47, 0 }
 0x284   :  { %1019 = vmatpush.bf16.msrb.mxu0 %v1010_v49 }
 0x285   :  { %v1382_v51 = vpop.eup %1381 }
 0x286   :  { %v996_v20 = vsel %vm241_vm2, %v1382_v51, 0.0  ;;  %v1002_v58 = vpack.c.bf16 %v1382_v51, %v1382_v51 }
 0x287   :  { %874 = vadd.xlane.f32.xlu0 %v873_v50 }
 0x28f   :  { %997 = vadd.xlane.f32.xlu0 %v996_v20 }
 0x290   :  { %1295 = vmatmul.msk.bf16.vlgmr.msra.gmra.mxu0 %vm241_vm2, %v879_v6 }
 0x292   :  { %v1128_v52 = vpop.permute.xlu1 %1127 }
 0x293   :  { %v1133_v53 = vsel %vm270_vm3, %v1128_v52, 0 }
 0x294   :  { %1142 = vmatpush.bf16.msra.mxu0 %v1133_v53 }
 0x29a   :  { %v1149_v55 = vpop.permute.xlu1 %1148 }
 0x29b   :  { %v1154_v57 = vsel %vm270_vm3, %v1149_v55, 0 }
 0x29c   :  { %1163 = vmatpush.bf16.msra.mxu1 %v1154_v57 }
 0x2a0   :  { %1299 = vmatmul.msk.bf16.vlgmr.msrb.gmra.mxu0 %vm241_vm2, %v1002_v58 }
 0x2a2   :  { %v406_v27 = vpop.f32.mrf.mxu0 }
 0x2a9   :  { %v1109_v60 = vpop.xlane.xlu2 %1108 }
 0x2aa   :  { %v1113_v62 = vsub.f32 %v1816_v13, %v1109_v60  ;;  %v408_v63 = vpop.f32.mrf.mxu0  ;;  %v427_v1 = vpop.f32.mrf.mxu1 }
 0x2ac   :  { %v1115_v56 = vmul.f32 1.442695, %v1113_v62 }
 0x2ad   :  { %v1112_v45 = vpop.xlane.xlu0 %1111 }
 0x2ae   :  { %1383 = vpow2.f32 %v1115_v56  ;;  %v1114_v3 = vsub.f32 %v1820_v16, %v1112_v45 }
 0x2b0   :  { %v1117_v4 = vmul.f32 1.442695, %v1114_v3 }
 0x2b1   :  { %v383_v21 = vpop.xlane.xlu2 %382 }
 0x2b2   :  { %1385 = vpow2.f32 %v1117_v4  ;;  %v429_v5 = vpop.f32.mrf.mxu1  ;;  %v529_v7 = vpop.f32.mrf.mxu0 }
 0x2b4   :  { %v1384_v8 = vpop.eup %1383 }
 0x2b5   :  { %v1125_v10 = vpack.c.bf16 %v1384_v8, %v1384_v8  ;;  %v259_v11 = vpop.xlane.xlu0 %258  ;;  %v1119_v12 = vsel %vm241_vm2, %v1384_v8, 0.0 }
 0x2b6   :  { %1387 = vrcp.f32 %v259_v11  ;;  %1120 = vadd.xlane.f32.xlu0 %v1119_v12 }
 0x2b7   :  { %1303 = vmatmul.msk.bf16.vlgmr.msra.gmra.mxu0 %vm241_vm2, %v1125_v10 }
 0x2b8   :  { %v1386_v13 = vpop.eup %1385 }
 0x2b9   :  { %v1126_v14 = vpack.c.bf16 %v1386_v13, %v1386_v13  ;;  %v1122_v61 = vsel %vm241_vm2, %v1386_v13, 0.0  ;;  %v509_v30 = vpop.xlane.xlu2 %508 }
 0x2ba   :  { %v531_v15 = vpop.f32.mrf.mxu0  ;;  %v550_v38 = vpop.f32.mrf.mxu1  ;;  %1123 = vadd.xlane.f32.xlu2 %v1122_v61 }
 0x2bb   :  { %1304 = vmatmul.msk.bf16.vlgmr.msra.gmra.mxu1 %vm241_vm2, %v1126_v14 }
 0x2bc   :  { %v1388_v16 = vpop.eup %1387 }
 0x2bd   :  { %v314_v17 = vmul.f32 %v1388_v16, %v1838_v29  ;;  %v386_v19 = vpop.xlane.xlu0 %385 }
 0x2be   :  { %1389 = vrcp.f32 %v386_v19 }
 0x2bf   :  { %316 = vst.msk [vmem:[#allocation2 + $0x8] sm:$0xff] %vm202_vm1, %v314_v17 }
 0x2c1   :  { %v632_v35 = vpop.xlane.xlu2 %631 }
 0x2c2   :  { %v552_v22 = vpop.f32.mrf.mxu1 }
 0x2c4   :  { %v1390_v23 = vpop.eup %1389 }
 0x2c5   :  { %v256_v24 = vpop.xlane.xlu1 %255  ;;  %v434_v28 = vmul.f32 %v1390_v23, %v427_v1 }
 0x2c6   :  { %1391 = vrcp.f32 %v256_v24 }
 0x2c7   :  { %1393 = vrcp.f32 %v383_v21  ;;  %439 = vrot.lane.b32.xlu1 %v434_v28, %s1573_s14 }
 0x2ca   :  { %v673_v32 = vpop.f32.mrf.mxu1 }
 0x2cc   :  { %v1392_v54 = vpop.eup %1391 }
 0x2cd   :  { %v1394_v2 = vpop.eup %1393  ;;  %v313_v33 = vmul.f32 %v1392_v54, %v1832_v39  ;;  %v506_v29 = vpop.xlane.xlu1 %505 }
 0x2ce   :  { %1395 = vrcp.f32 %v506_v29  ;;  %v433_v34 = vmul.f32 %v1394_v2, %v406_v27 }
 0x2cf   :  { %1397 = vrcp.f32 %v509_v30  ;;  %315 = vst.msk [vmem:[#allocation2] sm:$0xff] %vm202_vm1, %v313_v33  ;;  %v755_v44 = vpop.xlane.xlu2 %754 }
 0x2d0   :  { %1399 = vrcp.f32 %v632_v35  ;;  %v1320_v35 = vld [vmem:[#allocation11] sm:$0xff] }
 0x2d2   :  { %v675_v31 = vpop.f32.mrf.mxu1  ;;  %437 = vrot.lane.b32.xlu2 %v433_v34, %s1573_s14  ;;  %s1595_s14 = smov 16  }
 0x2d3   :  { %v1321_v31 = vld [vmem:[#allocation11 + $0x8] sm:$0xff] }
 0x2d4   :  { %v1396_v36 = vpop.eup %1395  ;;  %1216 = vmatpush.bf16.msra.mxu2 %v1321_v31 }
 0x2d5   :  { %v1398_v37 = vpop.eup %1397  ;;  %v556_v18 = vmul.f32 %v1396_v36, %v529_v7 }
 0x2d6   :  { %v557_v26 = vmul.f32 %v1398_v37, %v550_v38  ;;  %v1400_v39 = vpop.eup %1399 }
 0x2d7   :  { %560 = vrot.lane.b32.xlu0 %v556_v18, %s1593_s4  ;;  %v680_v41 = vmul.f32 %v1400_v39, %v673_v32 }
 0x2d8   :  { %1217 = vmatpush.bf16.msra.mxu2 %v1320_v35 }
 0x2da   :  { %v796_v40 = vpop.f32.mrf.mxu1  ;;  %562 = vrot.lane.b32.xlu2 %v557_v26, %s1593_s4 }
 0x2df   :  { %685 = vrot.lane.b32.xlu0 %v680_v41, %s1594_s22  ;;  %v878_v6 = vpop.xlane.xlu2 %877  ;;  %v1354_v41 = vld [vmem:[%s1919_s7] ss:$0 sm:$0xff] }
 0x2e0   :  { %v629_v42 = vpop.xlane.xlu0 %628 }
 0x2e1   :  { %1401 = vrcp.f32 %v629_v42 }
 0x2e2   :  { %v798_v43 = vpop.f32.mrf.mxu1  ;;  %1403 = vrcp.f32 %v755_v44 }
 0x2e7   :  { %v1402_v46 = vpop.eup %1401 }
 0x2e8   :  { %v1404_v47 = vpop.eup %1403 }
 0x2e9   :  { %v803_v49 = vmul.f32 %v1404_v47, %v796_v40 }
 0x2ea   :  { %v919_v9 = vpop.f32.mrf.mxu1 }
 0x2eb   :  { %v652_v25 = vpop.f32.mrf.mxu0 }
 0x2ec   :  { %v679_v59 = vmul.f32 %v1402_v46, %v652_v25 }
 0x2ee   :  { %683 = vrot.lane.b32.xlu1 %v679_v59, %s1594_s22 }
 0x2ef   :  { %v1001_v62 = vpop.xlane.xlu2 %1000 }
 0x2f2   :  { %v921_v0 = vpop.f32.mrf.mxu1  ;;  %v752_v50 = vpop.xlane.xlu0 %751 }
 0x2f3   :  { %v654_v48 = vpop.f32.mrf.mxu0  ;;  %1405 = vrcp.f32 %v752_v50 }
 0x2f4   :  { %1407 = vrcp.f32 %v878_v6 }
 0x2f6   :  { %808 = vrot.lane.b32.xlu1 %v803_v49, %s1595_s14 }
 0x2f9   :  { %v1406_v20 = vpop.eup %1405 }
 0x2fa   :  { %v1042_v51 = vpop.f32.mrf.mxu1  ;;  %v875_v57 = vpop.xlane.xlu0 %874 }
 0x2fb   :  { %v1408_v58 = vpop.eup %1407  ;;  %1409 = vrcp.f32 %v875_v57 }
 0x2fc   :  { %v926_v60 = vmul.f32 %v1408_v58, %v919_v9  ;;  %1411 = vrcp.f32 %v1001_v62 }
 0x2fd   :  { %v775_v52 = vpop.f32.mrf.mxu0 }
 0x2fe   :  { %v802_v53 = vmul.f32 %v1406_v20, %v775_v52 }
 0x300   :  { %806 = vrot.lane.b32.xlu2 %v802_v53, %s1595_s14 }
 0x301   :  { %v1410_v63 = vpop.eup %1409 }
 0x302   :  { %v1044_v55 = vpop.f32.mrf.mxu1  ;;  %v998_v45 = vpop.xlane.xlu0 %997 }
 0x303   :  { %v1412_v3 = vpop.eup %1411  ;;  %1413 = vrcp.f32 %v998_v45 }
 0x304   :  { %v1049_v5 = vmul.f32 %v1412_v3, %v1042_v51 }
 0x305   :  { %v777_v27 = vpop.f32.mrf.mxu0 }
 0x308   :  { %931 = vrot.lane.b32.xlu2 %v926_v60, %s1596_s23 }
 0x309   :  { %v1414_v7 = vpop.eup %1413 }
 0x30d   :  { %v898_v1 = vpop.f32.mrf.mxu0 }
 0x30e   :  { %v925_v56 = vmul.f32 %v1410_v63, %v898_v1 }
 0x310   :  { %929 = vrot.lane.b32.xlu0 %v925_v56, %s1596_s23 }
 0x315   :  { %v900_v4 = vpop.f32.mrf.mxu0 }
 0x318   :  { %1054 = vrot.lane.b32.xlu0 %v1049_v5, %s1597_s24 }
 0x31d   :  { %v1021_v8 = vpop.f32.mrf.mxu0 }
 0x31e   :  { %v1048_v10 = vmul.f32 %v1414_v7, %v1021_v8 }
 0x320   :  { %1052 = vrot.lane.b32.xlu1 %v1048_v10, %s1597_s24 }
 0x325   :  { %v1023_v11 = vpop.f32.mrf.mxu0 }
 0x329   :  { %v1121_v12 = vpop.xlane.xlu0 %1120 }
 0x32a   :  { %1415 = vrcp.f32 %v1121_v12 }
 0x32d   :  { %v1124_v13 = vpop.xlane.xlu2 %1123 }
 0x32e   :  { %1417 = vrcp.f32 %v1124_v13 }
 0x330   :  { %v1416_v14 = vpop.eup %1415 }
 0x334   :  { %v1144_v61 = vpop.f32.mrf.mxu0  ;;  %v1418_v16 = vpop.eup %1417 }
 0x335   :  { %v1171_v15 = vmul.f32 %v1416_v14, %v1144_v61  ;;  %v438_v38 = vpop.permute.xlu2 %437 }
 0x336   :  { %444 = vst.msk [vmem:[#allocation2] sm:$0xff] %vm443_vm4, %v438_v38 }
 0x337   :  { %1175 = vrot.lane.b32.xlu2 %v1171_v15, %s1598_s25 }
 0x338   :  { %v1165_v17 = vpop.f32.mrf.mxu1 }
 0x339   :  { %v1172_v19 = vmul.f32 %v1418_v16, %v1165_v17  ;;  %v440_v21 = vpop.permute.xlu1 %439 }
 0x33a   :  { %445 = vst.msk [vmem:[#allocation2 + $0x8] sm:$0xff] %vm443_vm4, %v440_v21 }
 0x33b   :  { %1177 = vrot.lane.b32.xlu1 %v1172_v19, %s1598_s25 }
 0x33c   :  { %v1146_v22 = vpop.f32.mrf.mxu0 }
 0x33d   :  { %v563_v23 = vpop.permute.xlu2 %562 }
 0x33e   :  { %568 = vst.msk [vmem:[#allocation2 + $0x8] sm:$0xff] %vm566_vm5, %v563_v23 }
 0x340   :  { %v1167_v24 = vpop.f32.mrf.mxu1 }
 0x349   :  { %v561_v28 = vpop.permute.xlu0 %560 }
 0x34a   :  { %567 = vst.msk [vmem:[#allocation2] sm:$0xff] %vm566_vm5, %v561_v28 }
 0x351   :  { %v686_v30 = vpop.permute.xlu0 %685 }
 0x352   :  { %691 = vst.msk [vmem:[#allocation2 + $0x8] sm:$0xff] %vm689_vm6, %v686_v30 }
 0x35a   :  { %v807_v32 = vpop.permute.xlu2 %806 }
 0x360   :  { %v684_v54 = vpop.permute.xlu1 %683 }
 0x361   :  { %690 = vst.msk [vmem:[#allocation2] sm:$0xff] %vm689_vm6, %v684_v54 }
 0x362   :  { %813 = vst.msk [vmem:[#allocation2] sm:$0xff] %vm812_vm7, %v807_v32  ;;  %v932_v33 = vpop.permute.xlu2 %931 }
 0x368   :  { %v809_v2 = vpop.permute.xlu1 %808 }
 0x369   :  { %814 = vst.msk [vmem:[#allocation2 + $0x8] sm:$0xff] %vm812_vm7, %v809_v2 }
 0x36a   :  { %937 = vst.msk [vmem:[#allocation2 + $0x8] sm:$0xff] %vm935_vm8, %v932_v33 }
 0x382   :  { %v930_v29 = vpop.permute.xlu0 %929 }
 0x383   :  { %936 = vst.msk [vmem:[#allocation2] sm:$0xff] %vm935_vm8, %v930_v29 }
 0x38a   :  { %v1055_v34 = vpop.permute.xlu0 %1054 }
 0x38b   :  { %1060 = vst.msk [vmem:[#allocation2 + $0x8] sm:$0xff] %vm1058_vm9, %v1055_v34 }
 0x391   :  { %v1176_v37 = vpop.permute.xlu2 %1175 }
 0x392   :  { %v1053_v36 = vpop.permute.xlu1 %1052 }
 0x393   :  { %1059 = vst.msk [vmem:[#allocation2] sm:$0xff] %vm1058_vm9, %v1053_v36 }
 0x394   :  { %1182 = vst.msk [vmem:[#allocation2] sm:$0xff] %vm1181_vm10, %v1176_v37 }
 0x39b   :  { %v1184_v26 = vld [vmem:[#allocation2] sm:$0xff] }
 0x3ad   :  { %v1178_v18 = vpop.permute.xlu1 %1177 }
 0x3ae   :  { %1183 = vst.msk [vmem:[#allocation2 + $0x8] sm:$0xff] %vm1181_vm10, %v1178_v18 }
 0x3b5   :  { %v1185_v40 = vld [vmem:[#allocation2 + $0x8] sm:$0xff] }
 0x3b6   :  { %v1186_v39 = vpack.c.bf16 %v1185_v40, %v1184_v26 }
 0x3b8   :  { %1313 = vmatmul.msk.bf16.vlgmr.msra.gmra.mxu2 %vm138_vm0, %v1186_v39 }
 0x43b   :  { %v1219_v42 = vpop.f32.mrf.mxu2 }
 0x43c   :  { %v1220_v43 = vadd.f32 %v1354_v41, %v1219_v42 }
 0x43e   :  { %1224 = vst.msk [vmem:[#allocation12] sm:$0xff] %vm138_vm0, %v1220_v43 }
 0x443   :  { %v1221_v44 = vpop.f32.mrf.mxu2 }
 0x444   :  { %v1222_v9 = vadd.f32 %v1354_v41, %v1221_v44 }
 0x446   :  { %1225 = vst.msk [vmem:[#allocation12 + $0x8] sm:$0xff] %vm138_vm0, %v1222_v9 }
 0x447   :  { %1238 = dma.vmem_to_hbm [thread:$0]  %s1231_s28, 256, %s1233_s29, [#allocation5], %s1600_s30, %s1600_s30, %s1593_s4  }
 0x448   :  { %1569 = dma.done.wait [#allocation5], 256  }
 0x449   :  { %1570 = vsyncadd [#allocation5], 4294967040 }
 0x44a   :  { %1243 = vsyncpa [#allocation4], 1 }
 0x44b   :  { %1244 = vsyncpa [#allocation7], 1 }
 0x44c   :  { %1245 = vsyncpa [#allocation10], 1 }
 0x44d   :  { %1246 = vsyncpa [#allocation5], 1 }

</bundles_post_ra>
